<compile_context>
chip_gen: v5e
topology: v5e:2x2
jax: 0.10.0
libtpu: 0.0.40
codegen_flags: <defaults>
</compile_context>

<pallas_src>
import math
from functools import partial

import jax
import jax.numpy as jnp
import numpy as np
from jax.experimental import pallas as pl
from jax.experimental.pallas import tpu as pltpu

# ----------------------------- model config (small, synthetic) ---------------
BATCH = 2
SEQ = 8            # max_length (real model: 77 -> pad to 80/128)
WIDTH = 128        # transformer width (real ViT-H-14 text: 1024); lane-dense
HEADS = 4          # real: 16
HEAD_DIM = WIDTH // HEADS
LAYERS = 2         # real: 24
MLP = 4 * WIDTH
VOCAB = 1000       # real: 49408
LN_EPS = 1e-5
LAYER = "last"     # layer_idx = 0 -> run all resblocks (module default)


# ----------------------------- kernel helpers --------------------------------
def _layernorm(v, w, b):
    mu = jnp.mean(v, axis=-1, keepdims=True)
    var = jnp.mean((v - mu) * (v - mu), axis=-1, keepdims=True)
    return (v - mu) * jax.lax.rsqrt(var + LN_EPS) * w + b


def _gelu_exact(x):
    # nn.GELU() default in open_clip resblocks: exact erf formulation.
    return 0.5 * x * (1.0 + jax.lax.erf(x * (1.0 / math.sqrt(2.0))))


# ----------------------------- fused transformer kernel ----------------------
def clip_text_kernel(x_ref,
                     ln1w_ref, ln1b_ref,
                     wqkv_ref, bqkv_ref, wo_ref, bo_ref,
                     ln2w_ref, ln2b_ref,
                     w1_ref, b1_ref, w2_ref, b2_ref,
                     lnfw_ref, lnfb_ref,
                     o_ref, *, num_heads):
    """Grid = (batch, layer).  One (S, D) tile per batch element stays resident in
    the output VMEM block across the (arbitrary) layer axis; per-layer weights are
    selected by the layer grid index and pipelined by BlockSpec."""
    layer = pl.program_id(1)
    n_layers = pl.num_programs(1)

    # first layer: seed the resident activation with the embedded tokens
    @pl.when(layer == 0)
    def _():
        o_ref[0] = x_ref[0]

    x = o_ref[0]                                     # (S, D) f32, VMEM-resident
    S, D = x.shape
    head_dim = D // num_heads
    scale = 1.0 / math.sqrt(head_dim)

    # ---------------- attention branch: x = x + attn(ln_1(x)) ----------------
    h = _layernorm(x, ln1w_ref[0], ln1b_ref[0]).astype(jnp.bfloat16)      # (S, D)

    # per-head QKV projection as one batched contraction (heads = batch dim)
    hb = jnp.broadcast_to(h, (3 * num_heads, S, D))                       # (3H, S, D)
    qkv = jnp.einsum('bsd,bde->bse', hb, wqkv_ref[0],
                     preferred_element_type=jnp.float32) + bqkv_ref[0]    # (3H, S, hd)
    q = qkv[0 * num_heads:1 * num_heads]                                  # (H, S, hd)
    k = qkv[1 * num_heads:2 * num_heads]
    v = qkv[2 * num_heads:3 * num_heads]

    # batched scores / softmax / context (f32 math)
    s = jnp.einsum('hqd,hkd->hqk', q, k,
                   preferred_element_type=jnp.float32) * scale            # (H, S, S)
    row = jax.lax.broadcasted_iota(jnp.int32, (S, S), 0)
    col = jax.lax.broadcasted_iota(jnp.int32, (S, S), 1)
    causal = jnp.where(col > row, -1e30, 0.0).astype(jnp.float32)         # finite sentinel
    s = s + causal[None]
    s = s - jnp.max(s, axis=-1, keepdims=True)
    p = jnp.exp(s)
    p = p * pl.reciprocal(jnp.sum(p, axis=-1, keepdims=True), approx=True)
    ctx = jnp.einsum('hqk,hkd->hqd', p, v,
                     preferred_element_type=jnp.float32)                  # (H, S, hd)

    # output projection: per-head partial products summed over heads (no concat)
    per_head = jnp.einsum('hqe,hed->hqd', ctx.astype(jnp.bfloat16), wo_ref[0],
                          preferred_element_type=jnp.float32)             # (H, S, D)
    attn = jnp.sum(per_head, axis=0) + bo_ref[0]                          # (S, D)
    x = x + attn

    # ---------------- MLP branch: x = x + mlp(ln_2(x)) ------------------------
    h2 = _layernorm(x, ln2w_ref[0], ln2b_ref[0]).astype(jnp.bfloat16)
    h2 = jnp.dot(h2, w1_ref[0], preferred_element_type=jnp.float32) + b1_ref[0]
    h2 = _gelu_exact(h2).astype(jnp.bfloat16)
    h2 = jnp.dot(h2, w2_ref[0], preferred_element_type=jnp.float32) + b2_ref[0]
    o_ref[0] = x + h2

    # last layer: apply ln_final in-place (fused, no extra kernel launch)
    @pl.when(layer == n_layers - 1)
    def _():
        o_ref[0] = _layernorm(o_ref[0], lnfw_ref[...], lnfb_ref[...])


# ----------------------------- wrapper ----------------------------------------
_STACK_ORDER = ("ln1_w", "ln1_b", "wqkv", "bqkv", "wo", "bo",
                "ln2_w", "ln2_b", "w1", "b1", "w2", "b2")


def _layer_spec(arr):
    """BlockSpec selecting one layer slice of a (L, ...) stacked parameter."""
    tail = arr.shape[1:]
    n_tail = len(tail)
    return pl.BlockSpec((1,) + tail, lambda b, l, _n=n_tail: (l,) + (0,) * _n)


def clip_text_pallas(x_emb, blocks, lnf_w, lnf_b):
    B, S, D = x_emb.shape
    n_layers = blocks["wqkv"].shape[0]
    assert n_layers >= 1

    in_specs = [pl.BlockSpec((1, S, D), lambda b, l: (b, 0, 0))]
    in_specs += [_layer_spec(blocks[name]) for name in _STACK_ORDER]
    in_specs += [pl.BlockSpec(lnf_w.shape, lambda b, l: (0, 0)),
                 pl.BlockSpec(lnf_b.shape, lambda b, l: (0, 0))]

    return pl.pallas_call(
        partial(clip_text_kernel, num_heads=HEADS),
        out_shape=jax.ShapeDtypeStruct((B, S, D), jnp.float32),
        grid=(B, n_layers),
        in_specs=in_specs,
        out_specs=pl.BlockSpec((1, S, D), lambda b, l: (b, 0, 0)),
        compiler_params=pltpu.CompilerParams(
            dimension_semantics=("parallel", "arbitrary"),
            vmem_limit_bytes=48 * 1024 * 1024),
    )(x_emb, *[blocks[name] for name in _STACK_ORDER], lnf_w, lnf_b)


def frozen_openclip_embedder_forward(tokens, params):
    """Mirrors FrozenOpenCLIPEmbedder.encode_with_transformer (layer='last')."""
    # token embedding (bf16 table) + positional embedding (gather + add: glue)
    x = params["token_embedding"][tokens].astype(jnp.float32) \
        + params["positional_embedding"][None]                      # (B, S, D) f32
    n_blocks = LAYERS if LAYER == "last" else LAYERS - 1
    blocks = params["blocks"]
    if n_blocks != LAYERS:
        blocks = {k: v[:n_blocks] for k, v in blocks.items()}
    return clip_text_pallas(x, blocks, params["lnf_w"], params["lnf_b"])


# ----------------------------- parameter init ---------------------------------
def init_params(key):
    """Synthetic frozen weights, already laid out for the kernel.

    Mapping from torch parameters (per resblock) to the stacked layout:
      wqkv[l, c*H + h, d, e] = attn.in_proj_weight[c*D + h*hd + e, d]   (c in {q,k,v})
      bqkv[l, c*H + h, 0, e] = attn.in_proj_bias  [c*D + h*hd + e]
      wo  [l, h, e, d]       = attn.out_proj.weight[d, h*hd + e]
      w1  [l]                = mlp.c_fc.weight.T ;  w2[l] = mlp.c_proj.weight.T
    """
    ks = jax.random.split(key, 12)

    def nrm(k, shape, scale=0.02, dtype=jnp.float32):
        return (scale * jax.random.normal(k, shape, jnp.float32)).astype(dtype)

    L, D, H, hd = LAYERS, WIDTH, HEADS, HEAD_DIM
    params = {
        "token_embedding": nrm(ks[0], (VOCAB, D), 0.02, jnp.bfloat16),
        "positional_embedding": nrm(ks[1], (SEQ, D), 0.01),
        "lnf_w": jnp.ones((1, D), jnp.float32),
        "lnf_b": jnp.zeros((1, D), jnp.float32),
        "blocks": {
            "ln1_w": jnp.ones((L, 1, D), jnp.float32),
            "ln1_b": jnp.zeros((L, 1, D), jnp.float32),
            "wqkv": nrm(ks[2], (L, 3 * H, D, hd), 0.02, jnp.bfloat16),
            "bqkv": nrm(ks[3], (L, 3 * H, 1, hd), 0.02),
            "wo":   nrm(ks[4], (L, H, hd, D), 0.02, jnp.bfloat16),
            "bo":   nrm(ks[5], (L, 1, D), 0.02),
            "ln2_w": jnp.ones((L, 1, D), jnp.float32),
            "ln2_b": jnp.zeros((L, 1, D), jnp.float32),
            "w1":   nrm(ks[6], (L, D, MLP), 0.02, jnp.bfloat16),
            "b1":   nrm(ks[7], (L, 1, MLP), 0.02),
            "w2":   nrm(ks[8], (L, MLP, D), 0.02, jnp.bfloat16),
            "b2":   nrm(ks[9], (L, 1, D), 0.02),
        },
    }
    return params


# ----------------------------- pure-JAX reference ------------------------------
def reference_forward(tokens, params):
    """Same math / same bf16-weight, f32-accumulate discipline, in plain XLA."""
    x = params["token_embedding"][tokens].astype(jnp.float32) \
        + params["positional_embedding"][None]
    blk = params["blocks"]
    hd = HEAD_DIM

    def ln(v, w, b):
        mu = v.mean(-1, keepdims=True)
        var = ((v - mu) ** 2).mean(-1, keepdims=True)
        return (v - mu) * jax.lax.rsqrt(var + LN_EPS) * w + b

    row = jnp.arange(SEQ)[:, None]
    col = jnp.arange(SEQ)[None, :]
    mask = jnp.where(col > row, -1e30, 0.0).astype(jnp.float32)          # (S, S)

    for li in range(LAYERS):
        h = ln(x, blk["ln1_w"][li], blk["ln1_b"][li]).astype(jnp.bfloat16)
        qkv = jnp.einsum('bsd,cde->bcse', h, blk["wqkv"][li],
                         preferred_element_type=jnp.float32) + blk["bqkv"][li][None]
        q, k, v = (qkv[:, :HEADS], qkv[:, HEADS:2 * HEADS], qkv[:, 2 * HEADS:])
        s = jnp.einsum('bhqe,bhke->bhqk', q, k,
                       preferred_element_type=jnp.float32) / math.sqrt(hd)
        s = s + mask
        pr = jax.nn.softmax(s, axis=-1)
        ctx = jnp.einsum('bhqk,bhke->bhqe', pr, v).astype(jnp.bfloat16)
        attn = jnp.einsum('bhqe,hed->bqd', ctx, blk["wo"][li],
                          preferred_element_type=jnp.float32) + blk["bo"][li]
        x = x + attn
        h2 = ln(x, blk["ln2_w"][li], blk["ln2_b"][li]).astype(jnp.bfloat16)
        h2 = jnp.einsum('bsd,df->bsf', h2, blk["w1"][li],
                        preferred_element_type=jnp.float32) + blk["b1"][li]
        h2 = (0.5 * h2 * (1.0 + jax.lax.erf(h2 / math.sqrt(2.0)))).astype(jnp.bfloat16)
        h2 = jnp.einsum('bsf,fd->bsd', h2, blk["w2"][li],
                        preferred_element_type=jnp.float32) + blk["b2"][li]
        x = x + h2
    return ln(x, params["lnf_w"], params["lnf_b"])


# ----------------------------- main --------------------------------------------
if __name__ == "__main__":
    key = jax.random.PRNGKey(0)
    kp, kt = jax.random.split(key)
    params = init_params(kp)
    # synthetic "tokenized text"  (TODO(synk): real BPE tokenizer not reproduced)
    tokens = jax.random.randint(kt, (BATCH, SEQ), 0, VOCAB, dtype=jnp.int32)

    z = frozen_openclip_embedder_forward(tokens, params)
    z = jax.block_until_ready(z)

    z_ref = reference_forward(tokens, params)
    np.testing.assert_allclose(np.asarray(z), np.asarray(z_ref), atol=2e-2, rtol=2e-2)
    assert z.shape == (BATCH, SEQ, WIDTH) and z.dtype == jnp.float32
    print("KERNEL_OK")
</pallas_src>

<mosaic_0001>
module attributes {stable_mosaic.version = 11 : i64} {
  func.func @clip_text_kernel(%arg0: i32, %arg1: i32, %arg2: memref<1x8x128xf32, #tpu.memory_space<vmem>>, %arg3: memref<1x1x128xf32, #tpu.memory_space<vmem>>, %arg4: memref<1x1x128xf32, #tpu.memory_space<vmem>>, %arg5: memref<1x12x128x32xbf16, #tpu.memory_space<vmem>>, %arg6: memref<1x12x1x32xf32, #tpu.memory_space<vmem>>, %arg7: memref<1x4x32x128xbf16, #tpu.memory_space<vmem>>, %arg8: memref<1x1x128xf32, #tpu.memory_space<vmem>>, %arg9: memref<1x1x128xf32, #tpu.memory_space<vmem>>, %arg10: memref<1x1x128xf32, #tpu.memory_space<vmem>>, %arg11: memref<1x128x512xbf16, #tpu.memory_space<vmem>>, %arg12: memref<1x1x512xf32, #tpu.memory_space<vmem>>, %arg13: memref<1x512x128xbf16, #tpu.memory_space<vmem>>, %arg14: memref<1x1x128xf32, #tpu.memory_space<vmem>>, %arg15: memref<1x128xf32, #tpu.memory_space<vmem>>, %arg16: memref<1x128xf32, #tpu.memory_space<vmem>>, %arg17: memref<1x8x128xf32, #tpu.memory_space<vmem>>) attributes {dimension_semantics = [#tpu.dimension_semantics<parallel>, #tpu.dimension_semantics<arbitrary>], iteration_bounds = array<i64: 2, 2>, scalar_prefetch = 0 : i64, scratch_operands = 0 : i64, tpu.core_type = #tpu.core_type<tc>, window_params = [{transform_indices = @transform_0, window_bounds = array<i64: 1, 8, 128>}, {transform_indices = @transform_1, window_bounds = array<i64: 1, 1, 128>}, {transform_indices = @transform_2, window_bounds = array<i64: 1, 1, 128>}, {transform_indices = @transform_3, window_bounds = array<i64: 1, 12, 128, 32>}, {transform_indices = @transform_4, window_bounds = array<i64: 1, 12, 1, 32>}, {transform_indices = @transform_5, window_bounds = array<i64: 1, 4, 32, 128>}, {transform_indices = @transform_6, window_bounds = array<i64: 1, 1, 128>}, {transform_indices = @transform_7, window_bounds = array<i64: 1, 1, 128>}, {transform_indices = @transform_8, window_bounds = array<i64: 1, 1, 128>}, {transform_indices = @transform_9, window_bounds = array<i64: 1, 128, 512>}, {transform_indices = @transform_10, window_bounds = array<i64: 1, 1, 512>}, {transform_indices = @transform_11, window_bounds = array<i64: 1, 512, 128>}, {transform_indices = @transform_12, window_bounds = array<i64: 1, 1, 128>}, {pipeline_mode = #tpu.pipeline_mode<synchronous>, transform_indices = @transform_13, window_bounds = array<i64: 1, 128>}, {pipeline_mode = #tpu.pipeline_mode<synchronous>, transform_indices = @transform_14, window_bounds = array<i64: 1, 128>}, {transform_indices = @transform_15, window_bounds = array<i64: 1, 8, 128>}]} {
    %c0_i32 = arith.constant 0 : i32
    %0 = arith.cmpi eq, %arg1, %c0_i32 : i32
    %1 = arith.extui %0 : i1 to i32
    %c0_i32_0 = arith.constant 0 : i32
    %2 = arith.cmpi ne, %1, %c0_i32_0 : i32
    scf.if %2 {
      %c0_70 = arith.constant 0 : index
      %c0_71 = arith.constant 0 : index
      %c0_72 = arith.constant 0 : index
      %138 = vector.load %arg2[%c0_70, %c0_71, %c0_72] : memref<1x8x128xf32, #tpu.memory_space<vmem>>, vector<1x8x128xf32>
      %139 = vector.shape_cast %138 : vector<1x8x128xf32> to vector<8x128xf32>
      %c0_73 = arith.constant 0 : index
      %c0_74 = arith.constant 0 : index
      %c0_75 = arith.constant 0 : index
      %140 = vector.load %arg17[%c0_73, %c0_74, %c0_75] : memref<1x8x128xf32, #tpu.memory_space<vmem>>, vector<1x8x128xf32>
      %141 = vector.shape_cast %140 : vector<1x8x128xf32> to vector<8x128xf32>
      %142 = vector.shape_cast %139 : vector<8x128xf32> to vector<1x8x128xf32>
      tpu.vector_store %arg17[%c0_73, %c0_74, %c0_75], %142 {strides = array<i32>} : memref<1x8x128xf32, #tpu.memory_space<vmem>>, vector<1x8x128xf32>,
    } else {
    }
    %c0 = arith.constant 0 : index
    %c0_1 = arith.constant 0 : index
    %c0_2 = arith.constant 0 : index
    %3 = vector.load %arg17[%c0, %c0_1, %c0_2] : memref<1x8x128xf32, #tpu.memory_space<vmem>>, vector<1x8x128xf32>
    %4 = vector.shape_cast %3 : vector<1x8x128xf32> to vector<8x128xf32>
    %c0_3 = arith.constant 0 : index
    %c0_4 = arith.constant 0 : index
    %c0_5 = arith.constant 0 : index
    %5 = vector.load %arg3[%c0_3, %c0_4, %c0_5] : memref<1x1x128xf32, #tpu.memory_space<vmem>>, vector<1x1x128xf32>
    %6 = vector.shape_cast %5 : vector<1x1x128xf32> to vector<1x128xf32>
    %c0_6 = arith.constant 0 : index
    %c0_7 = arith.constant 0 : index
    %c0_8 = arith.constant 0 : index
    %7 = vector.load %arg4[%c0_6, %c0_7, %c0_8] : memref<1x1x128xf32, #tpu.memory_space<vmem>>, vector<1x1x128xf32>
    %8 = vector.shape_cast %7 : vector<1x1x128xf32> to vector<1x128xf32>
    %cst = arith.constant dense<0.000000e+00> : vector<8xf32>
    %9 = vector.multi_reduction <add>, %4, %cst [1] : vector<8x128xf32> to vector<8xf32>
    %10 = vector.shape_cast %9 : vector<8xf32> to vector<8x1xf32>
    %cst_9 = arith.constant 1.280000e+02 : f32
    %11 = vector.broadcast %cst_9 : f32 to vector<8x1xf32>
    %12 = arith.divf %10, %11 : vector<8x1xf32>
    %13 = vector.broadcast %12 : vector<8x1xf32> to vector<8x128xf32>
    %14 = arith.subf %4, %13 : vector<8x128xf32>
    %15 = vector.broadcast %12 : vector<8x1xf32> to vector<8x128xf32>
    %16 = arith.subf %4, %15 : vector<8x128xf32>
    %17 = arith.mulf %14, %16 : vector<8x128xf32>
    %cst_10 = arith.constant dense<0.000000e+00> : vector<8xf32>
    %18 = vector.multi_reduction <add>, %17, %cst_10 [1] : vector<8x128xf32> to vector<8xf32>
    %19 = vector.shape_cast %18 : vector<8xf32> to vector<8x1xf32>
    %cst_11 = arith.constant 1.280000e+02 : f32
    %20 = vector.broadcast %cst_11 : f32 to vector<8x1xf32>
    %21 = arith.divf %19, %20 : vector<8x1xf32>
    %22 = vector.broadcast %12 : vector<8x1xf32> to vector<8x128xf32>
    %23 = arith.subf %4, %22 : vector<8x128xf32>
    %cst_12 = arith.constant 9.99999974E-6 : f32
    %24 = vector.broadcast %cst_12 : f32 to vector<8x1xf32>
    %25 = arith.addf %21, %24 : vector<8x1xf32>
    %26 = math.rsqrt %25 : vector<8x1xf32>
    %27 = vector.broadcast %26 : vector<8x1xf32> to vector<8x128xf32>
    %28 = arith.mulf %23, %27 : vector<8x128xf32>
    %29 = vector.broadcast %6 : vector<1x128xf32> to vector<8x128xf32>
    %30 = arith.mulf %28, %29 : vector<8x128xf32>
    %31 = vector.broadcast %8 : vector<1x128xf32> to vector<8x128xf32>
    %32 = arith.addf %30, %31 : vector<8x128xf32>
    %33 = arith.truncf %32 : vector<8x128xf32> to vector<8x128xbf16>
    %34 = vector.shape_cast %33 : vector<8x128xbf16> to vector<1x8x128xbf16>
    %35 = vector.broadcast %34 : vector<1x8x128xbf16> to vector<12x8x128xbf16>
    %c0_13 = arith.constant 0 : index
    %c0_14 = arith.constant 0 : index
    %c0_15 = arith.constant 0 : index
    %c0_16 = arith.constant 0 : index
    %36 = vector.load %arg5[%c0_13, %c0_14, %c0_15, %c0_16] : memref<1x12x128x32xbf16, #tpu.memory_space<vmem>>, vector<1x12x128x32xbf16>
    %37 = vector.shape_cast %36 : vector<1x12x128x32xbf16> to vector<12x128x32xbf16>
    "tpu.trace_start"() <{level = 10 : i32, message = "bsd,bde->bse"}> : () -> ()
    %cst_17 = arith.constant dense<0.000000e+00> : vector<12x8x32xf32>
    %38 = tpu.matmul %35, %37, %cst_17 {dimension_numbers = #tpu.dot_dimension_numbers<[2], [1], [1], [2], [0, 0, 0, 1, 1, 2], [0], [0]>} : vector<12x8x128xbf16>, vector<12x128x32xbf16>, vector<12x8x32xf32> -> vector<12x8x32xf32>
    "tpu.trace_stop"() : () -> ()
    %c0_18 = arith.constant 0 : index
    %c0_19 = arith.constant 0 : index
    %c0_20 = arith.constant 0 : index
    %c0_21 = arith.constant 0 : index
    %39 = vector.load %arg6[%c0_18, %c0_19, %c0_20, %c0_21] : memref<1x12x1x32xf32, #tpu.memory_space<vmem>>, vector<1x12x1x32xf32>
    %40 = vector.shape_cast %39 : vector<1x12x1x32xf32> to vector<12x1x32xf32>
    %41 = vector.broadcast %40 : vector<12x1x32xf32> to vector<12x8x32xf32>
    %42 = arith.addf %38, %41 : vector<12x8x32xf32>
    %43 = vector.extract_strided_slice %42 {offsets = [0, 0, 0], sizes = [4, 8, 32], strides = [1, 1, 1]} : vector<12x8x32xf32> to vector<4x8x32xf32>
    %44 = vector.extract_strided_slice %42 {offsets = [4, 0, 0], sizes = [4, 8, 32], strides = [1, 1, 1]} : vector<12x8x32xf32> to vector<4x8x32xf32>
    %45 = vector.extract_strided_slice %42 {offsets = [8, 0, 0], sizes = [4, 8, 32], strides = [1, 1, 1]} : vector<12x8x32xf32> to vector<4x8x32xf32>
    "tpu.trace_start"() <{level = 10 : i32, message = "hqd,hkd->hqk"}> : () -> ()
    %cst_22 = arith.constant dense<0.000000e+00> : vector<4x8x8xf32>
    %46 = tpu.matmul %43, %44, %cst_22 {dimension_numbers = #tpu.dot_dimension_numbers<[2], [2], [1], [1], [0, 0, 0, 1, 1, 1], [0], [0]>} : vector<4x8x32xf32>, vector<4x8x32xf32>, vector<4x8x8xf32> -> vector<4x8x8xf32>
    "tpu.trace_stop"() : () -> ()
    %cst_23 = arith.constant 0.176776692 : f32
    %47 = vector.broadcast %cst_23 : f32 to vector<4x8x8xf32>
    %48 = arith.mulf %46, %47 : vector<4x8x8xf32>
    %49 = tpu.iota {dimensions = array<i32: 0>} : vector<8x8xi32>
    %50 = tpu.iota {dimensions = array<i32: 1>} : vector<8x8xi32>
    %51 = arith.cmpi sgt, %50, %49 : vector<8x8xi32>
    %cst_24 = arith.constant -1.000000e+30 : f32
    %cst_25 = arith.constant 0.000000e+00 : f32
    %52 = vector.broadcast %cst_24 : f32 to vector<8x8xf32>
    %53 = vector.broadcast %cst_25 : f32 to vector<8x8xf32>
    %54 = arith.select %51, %52, %53 : vector<8x8xi1>, vector<8x8xf32>
    %55 = vector.shape_cast %54 : vector<8x8xf32> to vector<1x8x8xf32>
    %56 = vector.broadcast %55 : vector<1x8x8xf32> to vector<4x8x8xf32>
    %57 = arith.addf %48, %56 : vector<4x8x8xf32>
    %cst_26 = arith.constant dense<0xFF800000> : vector<4x8xf32>
    %58 = vector.multi_reduction <maximumf>, %57, %cst_26 [2] : vector<4x8x8xf32> to vector<4x8xf32>
    %59 = vector.shape_cast %58 : vector<4x8xf32> to vector<4x8x1xf32>
    %60 = vector.broadcast %59 : vector<4x8x1xf32> to vector<4x8x8xf32>
    %61 = arith.subf %57, %60 : vector<4x8x8xf32>
    %62 = math.exp %61 : vector<4x8x8xf32>
    %cst_27 = arith.constant dense<0.000000e+00> : vector<4x8xf32>
    %63 = vector.multi_reduction <add>, %62, %cst_27 [2] : vector<4x8x8xf32> to vector<4x8xf32>
    %64 = vector.shape_cast %63 : vector<4x8xf32> to vector<4x8x1xf32>
    %65 = tpu.reciprocal %64 {approx = true} : vector<4x8x1xf32> -> vector<4x8x1xf32>
    %66 = vector.broadcast %65 : vector<4x8x1xf32> to vector<4x8x8xf32>
    %67 = arith.mulf %62, %66 : vector<4x8x8xf32>
    "tpu.trace_start"() <{level = 10 : i32, message = "hqk,hkd->hqd"}> : () -> ()
    %cst_28 = arith.constant dense<0.000000e+00> : vector<4x8x32xf32>
    %68 = tpu.matmul %67, %45, %cst_28 {dimension_numbers = #tpu.dot_dimension_numbers<[2], [1], [1], [2], [0, 0, 0, 1, 1, 2], [0], [0]>} : vector<4x8x8xf32>, vector<4x8x32xf32>, vector<4x8x32xf32> -> vector<4x8x32xf32>
    "tpu.trace_stop"() : () -> ()
    %69 = arith.truncf %68 : vector<4x8x32xf32> to vector<4x8x32xbf16>
    %c0_29 = arith.constant 0 : index
    %c0_30 = arith.constant 0 : index
    %c0_31 = arith.constant 0 : index
    %c0_32 = arith.constant 0 : index
    %70 = vector.load %arg7[%c0_29, %c0_30, %c0_31, %c0_32] : memref<1x4x32x128xbf16, #tpu.memory_space<vmem>>, vector<1x4x32x128xbf16>
    %71 = vector.shape_cast %70 : vector<1x4x32x128xbf16> to vector<4x32x128xbf16>
    "tpu.trace_start"() <{level = 10 : i32, message = "hqe,hed->hqd"}> : () -> ()
    %cst_33 = arith.constant dense<0.000000e+00> : vector<4x8x128xf32>
    %72 = tpu.matmul %69, %71, %cst_33 {dimension_numbers = #tpu.dot_dimension_numbers<[2], [1], [1], [2], [0, 0, 0, 1, 1, 2], [0], [0]>} : vector<4x8x32xbf16>, vector<4x32x128xbf16>, vector<4x8x128xf32> -> vector<4x8x128xf32>
    "tpu.trace_stop"() : () -> ()
    %cst_34 = arith.constant dense<0.000000e+00> : vector<8x128xf32>
    %73 = vector.multi_reduction <add>, %72, %cst_34 [0] : vector<4x8x128xf32> to vector<8x128xf32>
    %c0_35 = arith.constant 0 : index
    %c0_36 = arith.constant 0 : index
    %c0_37 = arith.constant 0 : index
    %74 = vector.load %arg8[%c0_35, %c0_36, %c0_37] : memref<1x1x128xf32, #tpu.memory_space<vmem>>, vector<1x1x128xf32>
    %75 = vector.shape_cast %74 : vector<1x1x128xf32> to vector<1x128xf32>
    %76 = vector.broadcast %75 : vector<1x128xf32> to vector<8x128xf32>
    %77 = arith.addf %73, %76 : vector<8x128xf32>
    %78 = arith.addf %4, %77 : vector<8x128xf32>
    %c0_38 = arith.constant 0 : index
    %c0_39 = arith.constant 0 : index
    %c0_40 = arith.constant 0 : index
    %79 = vector.load %arg9[%c0_38, %c0_39, %c0_40] : memref<1x1x128xf32, #tpu.memory_space<vmem>>, vector<1x1x128xf32>
    %80 = vector.shape_cast %79 : vector<1x1x128xf32> to vector<1x128xf32>
    %c0_41 = arith.constant 0 : index
    %c0_42 = arith.constant 0 : index
    %c0_43 = arith.constant 0 : index
    %81 = vector.load %arg10[%c0_41, %c0_42, %c0_43] : memref<1x1x128xf32, #tpu.memory_space<vmem>>, vector<1x1x128xf32>
    %82 = vector.shape_cast %81 : vector<1x1x128xf32> to vector<1x128xf32>
    %cst_44 = arith.constant dense<0.000000e+00> : vector<8xf32>
    %83 = vector.multi_reduction <add>, %78, %cst_44 [1] : vector<8x128xf32> to vector<8xf32>
    %84 = vector.shape_cast %83 : vector<8xf32> to vector<8x1xf32>
    %cst_45 = arith.constant 1.280000e+02 : f32
    %85 = vector.broadcast %cst_45 : f32 to vector<8x1xf32>
    %86 = arith.divf %84, %85 : vector<8x1xf32>
    %87 = vector.broadcast %86 : vector<8x1xf32> to vector<8x128xf32>
    %88 = arith.subf %78, %87 : vector<8x128xf32>
    %89 = vector.broadcast %86 : vector<8x1xf32> to vector<8x128xf32>
    %90 = arith.subf %78, %89 : vector<8x128xf32>
    %91 = arith.mulf %88, %90 : vector<8x128xf32>
    %cst_46 = arith.constant dense<0.000000e+00> : vector<8xf32>
    %92 = vector.multi_reduction <add>, %91, %cst_46 [1] : vector<8x128xf32> to vector<8xf32>
    %93 = vector.shape_cast %92 : vector<8xf32> to vector<8x1xf32>
    %cst_47 = arith.constant 1.280000e+02 : f32
    %94 = vector.broadcast %cst_47 : f32 to vector<8x1xf32>
    %95 = arith.divf %93, %94 : vector<8x1xf32>
    %96 = vector.broadcast %86 : vector<8x1xf32> to vector<8x128xf32>
    %97 = arith.subf %78, %96 : vector<8x128xf32>
    %cst_48 = arith.constant 9.99999974E-6 : f32
    %98 = vector.broadcast %cst_48 : f32 to vector<8x1xf32>
    %99 = arith.addf %95, %98 : vector<8x1xf32>
    %100 = math.rsqrt %99 : vector<8x1xf32>
    %101 = vector.broadcast %100 : vector<8x1xf32> to vector<8x128xf32>
    %102 = arith.mulf %97, %101 : vector<8x128xf32>
    %103 = vector.broadcast %80 : vector<1x128xf32> to vector<8x128xf32>
    %104 = arith.mulf %102, %103 : vector<8x128xf32>
    %105 = vector.broadcast %82 : vector<1x128xf32> to vector<8x128xf32>
    %106 = arith.addf %104, %105 : vector<8x128xf32>
    %107 = arith.truncf %106 : vector<8x128xf32> to vector<8x128xbf16>
    %c0_49 = arith.constant 0 : index
    %c0_50 = arith.constant 0 : index
    %c0_51 = arith.constant 0 : index
    %108 = vector.load %arg11[%c0_49, %c0_50, %c0_51] : memref<1x128x512xbf16, #tpu.memory_space<vmem>>, vector<1x128x512xbf16>
    %109 = vector.shape_cast %108 : vector<1x128x512xbf16> to vector<128x512xbf16>
    %cst_52 = arith.constant dense<0.000000e+00> : vector<8x512xf32>
    %110 = tpu.matmul %107, %109, %cst_52 {dimension_numbers = #tpu.dot_dimension_numbers<[1], [0], [0], [1], [0, 0, 1, 1], [], []>} : vector<8x128xbf16>, vector<128x512xbf16>, vector<8x512xf32> -> vector<8x512xf32>
    %c0_53 = arith.constant 0 : index
    %c0_54 = arith.constant 0 : index
    %c0_55 = arith.constant 0 : index
    %111 = vector.load %arg12[%c0_53, %c0_54, %c0_55] : memref<1x1x512xf32, #tpu.memory_space<vmem>>, vector<1x1x512xf32>
    %112 = vector.shape_cast %111 : vector<1x1x512xf32> to vector<1x512xf32>
    %113 = vector.broadcast %112 : vector<1x512xf32> to vector<8x512xf32>
    %114 = arith.addf %110, %113 : vector<8x512xf32>
    %cst_56 = arith.constant 5.000000e-01 : f32
    %115 = vector.broadcast %cst_56 : f32 to vector<8x512xf32>
    %116 = arith.mulf %115, %114 : vector<8x512xf32>
    %cst_57 = arith.constant 0.707106769 : f32
    %117 = vector.broadcast %cst_57 : f32 to vector<8x512xf32>
    %118 = arith.mulf %114, %117 : vector<8x512xf32>
    %119 = math.erf %118 : vector<8x512xf32>
    %cst_58 = arith.constant 1.000000e+00 : f32
    %120 = vector.broadcast %cst_58 : f32 to vector<8x512xf32>
    %121 = arith.addf %120, %119 : vector<8x512xf32>
    %122 = arith.mulf %116, %121 : vector<8x512xf32>
    %123 = arith.truncf %122 : vector<8x512xf32> to vector<8x512xbf16>
    %c0_59 = arith.constant 0 : index
    %c0_60 = arith.constant 0 : index
    %c0_61 = arith.constant 0 : index
    %124 = vector.load %arg13[%c0_59, %c0_60, %c0_61] : memref<1x512x128xbf16, #tpu.memory_space<vmem>>, vector<1x512x128xbf16>
    %125 = vector.shape_cast %124 : vector<1x512x128xbf16> to vector<512x128xbf16>
    %cst_62 = arith.constant dense<0.000000e+00> : vector<8x128xf32>
    %126 = tpu.matmul %123, %125, %cst_62 {dimension_numbers = #tpu.dot_dimension_numbers<[1], [0], [0], [1], [0, 0, 1, 1], [], []>} : vector<8x512xbf16>, vector<512x128xbf16>, vector<8x128xf32> -> vector<8x128xf32>
    %c0_63 = arith.constant 0 : index
    %c0_64 = arith.constant 0 : index
    %c0_65 = arith.constant 0 : index
    %127 = vector.load %arg14[%c0_63, %c0_64, %c0_65] : memref<1x1x128xf32, #tpu.memory_space<vmem>>, vector<1x1x128xf32>
    %128 = vector.shape_cast %127 : vector<1x1x128xf32> to vector<1x128xf32>
    %129 = vector.broadcast %128 : vector<1x128xf32> to vector<8x128xf32>
    %130 = arith.addf %126, %129 : vector<8x128xf32>
    %131 = arith.addf %78, %130 : vector<8x128xf32>
    %c0_66 = arith.constant 0 : index
    %c0_67 = arith.constant 0 : index
    %c0_68 = arith.constant 0 : index
    %132 = vector.load %arg17[%c0_66, %c0_67, %c0_68] : memref<1x8x128xf32, #tpu.memory_space<vmem>>, vector<1x8x128xf32>
    %133 = vector.shape_cast %132 : vector<1x8x128xf32> to vector<8x128xf32>
    %134 = vector.shape_cast %131 : vector<8x128xf32> to vector<1x8x128xf32>
    tpu.vector_store %arg17[%c0_66, %c0_67, %c0_68], %134 {strides = array<i32>} : memref<1x8x128xf32, #tpu.memory_space<vmem>>, vector<1x8x128xf32>,
    %c1_i32 = arith.constant 1 : i32
    %135 = arith.cmpi eq, %arg1, %c1_i32 : i32
    %136 = arith.extui %135 : i1 to i32
    %c0_i32_69 = arith.constant 0 : i32
    %137 = arith.cmpi ne, %136, %c0_i32_69 : i32
    scf.if %137 {
      %c0_70 = arith.constant 0 : index
      %c0_71 = arith.constant 0 : index
      %c0_72 = arith.constant 0 : index
      %138 = vector.load %arg17[%c0_70, %c0_71, %c0_72] : memref<1x8x128xf32, #tpu.memory_space<vmem>>, vector<1x8x128xf32>
      %139 = vector.shape_cast %138 : vector<1x8x128xf32> to vector<8x128xf32>
      %c0_73 = arith.constant 0 : index
      %c0_74 = arith.constant 0 : index
      %140 = vector.load %arg15[%c0_73, %c0_74] : memref<1x128xf32, #tpu.memory_space<vmem>>, vector<1x128xf32>
      %c0_75 = arith.constant 0 : index
      %c0_76 = arith.constant 0 : index
      %141 = vector.load %arg16[%c0_75, %c0_76] : memref<1x128xf32, #tpu.memory_space<vmem>>, vector<1x128xf32>
      %cst_77 = arith.constant dense<0.000000e+00> : vector<8xf32>
      %142 = vector.multi_reduction <add>, %139, %cst_77 [1] : vector<8x128xf32> to vector<8xf32>
      %143 = vector.shape_cast %142 : vector<8xf32> to vector<8x1xf32>
      %cst_78 = arith.constant 1.280000e+02 : f32
      %144 = vector.broadcast %cst_78 : f32 to vector<8x1xf32>
      %145 = arith.divf %143, %144 : vector<8x1xf32>
      %146 = vector.broadcast %145 : vector<8x1xf32> to vector<8x128xf32>
      %147 = arith.subf %139, %146 : vector<8x128xf32>
      %148 = vector.broadcast %145 : vector<8x1xf32> to vector<8x128xf32>
      %149 = arith.subf %139, %148 : vector<8x128xf32>
      %150 = arith.mulf %147, %149 : vector<8x128xf32>
      %cst_79 = arith.constant dense<0.000000e+00> : vector<8xf32>
      %151 = vector.multi_reduction <add>, %150, %cst_79 [1] : vector<8x128xf32> to vector<8xf32>
      %152 = vector.shape_cast %151 : vector<8xf32> to vector<8x1xf32>
      %cst_80 = arith.constant 1.280000e+02 : f32
      %153 = vector.broadcast %cst_80 : f32 to vector<8x1xf32>
      %154 = arith.divf %152, %153 : vector<8x1xf32>
      %155 = vector.broadcast %145 : vector<8x1xf32> to vector<8x128xf32>
      %156 = arith.subf %139, %155 : vector<8x128xf32>
      %cst_81 = arith.constant 9.99999974E-6 : f32
      %157 = vector.broadcast %cst_81 : f32 to vector<8x1xf32>
      %158 = arith.addf %154, %157 : vector<8x1xf32>
      %159 = math.rsqrt %158 : vector<8x1xf32>
      %160 = vector.broadcast %159 : vector<8x1xf32> to vector<8x128xf32>
      %161 = arith.mulf %156, %160 : vector<8x128xf32>
      %162 = vector.broadcast %140 : vector<1x128xf32> to vector<8x128xf32>
      %163 = arith.mulf %161, %162 : vector<8x128xf32>
      %164 = vector.broadcast %141 : vector<1x128xf32> to vector<8x128xf32>
      %165 = arith.addf %163, %164 : vector<8x128xf32>
      %c0_82 = arith.constant 0 : index
      %c0_83 = arith.constant 0 : index
      %c0_84 = arith.constant 0 : index
      %166 = vector.load %arg17[%c0_82, %c0_83, %c0_84] : memref<1x8x128xf32, #tpu.memory_space<vmem>>, vector<1x8x128xf32>
      %167 = vector.shape_cast %166 : vector<1x8x128xf32> to vector<8x128xf32>
      %168 = vector.shape_cast %165 : vector<8x128xf32> to vector<1x8x128xf32>
      tpu.vector_store %arg17[%c0_82, %c0_83, %c0_84], %168 {strides = array<i32>} : memref<1x8x128xf32, #tpu.memory_space<vmem>>, vector<1x8x128xf32>,
    } else {
    }
    return
  }
  func.func @transform_0(%arg0: i32, %arg1: i32) -> (i32, i32, i32) {
    %c0_i32 = arith.constant 0 : i32
    %c0_i32_0 = arith.constant 0 : i32
    %c0_i32_1 = arith.constant 0 : i32
    return %arg0, %c0_i32, %c0_i32_0 : i32, i32, i32
  }
  func.func @transform_1(%arg0: i32, %arg1: i32) -> (i32, i32, i32) {
    %c0_i32 = arith.constant 0 : i32
    %c0_i32_0 = arith.constant 0 : i32
    %c0_i32_1 = arith.constant 0 : i32
    return %arg1, %c0_i32, %c0_i32_0 : i32, i32, i32
  }
  func.func @transform_2(%arg0: i32, %arg1: i32) -> (i32, i32, i32) {
    %c0_i32 = arith.constant 0 : i32
    %c0_i32_0 = arith.constant 0 : i32
    %c0_i32_1 = arith.constant 0 : i32
    return %arg1, %c0_i32, %c0_i32_0 : i32, i32, i32
  }
  func.func @transform_3(%arg0: i32, %arg1: i32) -> (i32, i32, i32, i32) {
    %c0_i32 = arith.constant 0 : i32
    %c0_i32_0 = arith.constant 0 : i32
    %c0_i32_1 = arith.constant 0 : i32
    %c0_i32_2 = arith.constant 0 : i32
    return %arg1, %c0_i32, %c0_i32_0, %c0_i32_1 : i32, i32, i32, i32
  }
  func.func @transform_4(%arg0: i32, %arg1: i32) -> (i32, i32, i32, i32) {
    %c0_i32 = arith.constant 0 : i32
    %c0_i32_0 = arith.constant 0 : i32
    %c0_i32_1 = arith.constant 0 : i32
    %c0_i32_2 = arith.constant 0 : i32
    return %arg1, %c0_i32, %c0_i32_0, %c0_i32_1 : i32, i32, i32, i32
  }
  func.func @transform_5(%arg0: i32, %arg1: i32) -> (i32, i32, i32, i32) {
    %c0_i32 = arith.constant 0 : i32
    %c0_i32_0 = arith.constant 0 : i32
    %c0_i32_1 = arith.constant 0 : i32
    %c0_i32_2 = arith.constant 0 : i32
    return %arg1, %c0_i32, %c0_i32_0, %c0_i32_1 : i32, i32, i32, i32
  }
  func.func @transform_6(%arg0: i32, %arg1: i32) -> (i32, i32, i32) {
    %c0_i32 = arith.constant 0 : i32
    %c0_i32_0 = arith.constant 0 : i32
    %c0_i32_1 = arith.constant 0 : i32
    return %arg1, %c0_i32, %c0_i32_0 : i32, i32, i32
  }
  func.func @transform_7(%arg0: i32, %arg1: i32) -> (i32, i32, i32) {
    %c0_i32 = arith.constant 0 : i32
    %c0_i32_0 = arith.constant 0 : i32
    %c0_i32_1 = arith.constant 0 : i32
    return %arg1, %c0_i32, %c0_i32_0 : i32, i32, i32
  }
  func.func @transform_8(%arg0: i32, %arg1: i32) -> (i32, i32, i32) {
    %c0_i32 = arith.constant 0 : i32
    %c0_i32_0 = arith.constant 0 : i32
    %c0_i32_1 = arith.constant 0 : i32
    return %arg1, %c0_i32, %c0_i32_0 : i32, i32, i32
  }
  func.func @transform_9(%arg0: i32, %arg1: i32) -> (i32, i32, i32) {
    %c0_i32 = arith.constant 0 : i32
    %c0_i32_0 = arith.constant 0 : i32
    %c0_i32_1 = arith.constant 0 : i32
    return %arg1, %c0_i32, %c0_i32_0 : i32, i32, i32
  }
  func.func @transform_10(%arg0: i32, %arg1: i32) -> (i32, i32, i32) {
    %c0_i32 = arith.constant 0 : i32
    %c0_i32_0 = arith.constant 0 : i32
    %c0_i32_1 = arith.constant 0 : i32
    return %arg1, %c0_i32, %c0_i32_0 : i32, i32, i32
  }
  func.func @transform_11(%arg0: i32, %arg1: i32) -> (i32, i32, i32) {
    %c0_i32 = arith.constant 0 : i32
    %c0_i32_0 = arith.constant 0 : i32
    %c0_i32_1 = arith.constant 0 : i32
    return %arg1, %c0_i32, %c0_i32_0 : i32, i32, i32
  }
  func.func @transform_12(%arg0: i32, %arg1: i32) -> (i32, i32, i32) {
    %c0_i32 = arith.constant 0 : i32
    %c0_i32_0 = arith.constant 0 : i32
    %c0_i32_1 = arith.constant 0 : i32
    return %arg1, %c0_i32, %c0_i32_0 : i32, i32, i32
  }
  func.func @transform_13(%arg0: i32, %arg1: i32) -> (i32, i32) {
    %c0_i32 = arith.constant 0 : i32
    %c0_i32_0 = arith.constant 0 : i32
    %c0_i32_1 = arith.constant 0 : i32
    return %c0_i32, %c0_i32_0 : i32, i32
  }
  func.func @transform_14(%arg0: i32, %arg1: i32) -> (i32, i32) {
    %c0_i32 = arith.constant 0 : i32
    %c0_i32_0 = arith.constant 0 : i32
    %c0_i32_1 = arith.constant 0 : i32
    return %c0_i32, %c0_i32_0 : i32, i32
  }
  func.func @transform_15(%arg0: i32, %arg1: i32) -> (i32, i32, i32) {
    %c0_i32 = arith.constant 0 : i32
    %c0_i32_0 = arith.constant 0 : i32
    %c0_i32_1 = arith.constant 0 : i32
    return %arg0, %c0_i32, %c0_i32_0 : i32, i32, i32
  }
}

</mosaic_0001>

<bundles_post_ra>
// kernel: tpu_custom_call.1
= control target key start
LH: loop header
LB: loop body
LE: loop exit
PB: predicated region body
PF: predicated region fallthrough
CT: control target
= control target key end

     0   :  { %s4946_s0 = inlined_call_operand.vmem [shape: f32[2,8,128], index: 0, kind: input, shape index: {}]   ;;  %s4947_s1 = inlined_call_operand.vmem [shape: f32[2,1,128], index: 1, kind: input, shape index: {}]   ;;  %s4948_s2 = inlined_call_operand.vmem [shape: f32[2,1,128], index: 2, kind: input, shape index: {}]   ;;  %s4949_s3 = inlined_call_operand.vmem [shape: bf16[2,12,128,32], index: 3, kind: input, shape index: {}]   ;;  %s4950_s4 = inlined_call_operand.vmem [shape: f32[2,12,1,32], index: 4, kind: input, shape index: {}]   ;;  %s4951_s5 = inlined_call_operand.vmem [shape: bf16[2,4,32,128], index: 5, kind: input, shape index: {}]   ;;  %s4952_s6 = inlined_call_operand.vmem [shape: f32[2,1,128], index: 6, kind: input, shape index: {}]   ;;  %s4953_s7 = inlined_call_operand.vmem [shape: f32[2,1,128], index: 7, kind: input, shape index: {}]   ;;  %s4954_s8 = inlined_call_operand.vmem [shape: f32[2,1,128], index: 8, kind: input, shape index: {}]   ;;  %s4955_s9 = inlined_call_operand.vmem [shape: bf16[2,128,512], index: 9, kind: input, shape index: {}]   ;;  %s4956_s10 = inlined_call_operand.vmem [shape: f32[2,1,512], index: 10, kind: input, shape index: {}]   ;;  %s4957_s11 = inlined_call_operand.vmem [shape: bf16[2,512,128], index: 11, kind: input, shape index: {}]   ;;  %s4958_s12 = inlined_call_operand.vmem [shape: f32[2,1,128], index: 12, kind: input, shape index: {}]   ;;  %s4959_s13 = inlined_call_operand.vmem [shape: f32[1,128], index: 13, kind: input, shape index: {}]   ;;  %s4960_s14 = inlined_call_operand.vmem [shape: f32[1,128], index: 14, kind: input, shape index: {}]   ;;  %s4961_s15 = inlined_call_operand.hbm [shape: f32[2,8,128], index: 15, kind: output, shape index: {}]  }
   0x1   :  { %4977 = sst [smem:[#allocation18_spill]] %s4946_s0 }
   0x2   :  { %4978 = sst [smem:[#allocation19_spill]] %s4949_s3 }
   0x3   :  { %4979 = sst [smem:[#allocation20_spill]] %s4950_s4 }
   0x4   :  { %4980 = sst [smem:[#allocation21_spill]] %s4951_s5 }
   0x5   :  { %4981 = sst [smem:[#allocation22_spill]] %s4958_s12 }
   0x6   :  { %4982 = sst [smem:[#allocation23_spill]] %s4959_s13 }
   0x7   :  { %4983 = sst [smem:[#allocation24_spill]] %s4960_s14 }
   0x8   :  { %4984 = sst [smem:[#allocation25_spill]] %s4961_s15 }
   0x9   :  { %20 = vsyncpa [#allocation3], 0 }
   0xa   :  { %22 = vsyncpa [#allocation3 + $0x1], 0  ;;  %s4331_s18 = smov 0   ;;  %s4333_s19 = smov 0  }
   0xb   :  { %s4335_s20 = smov 0   ;;  %s4337_s21 = smov 0  }
   0xc   :  { %s4339_s22 = smov 0   ;;  %s4341_s23 = smov 0  }
   0xd   :  { %s4343_s24 = smov 0   ;;  %s4345_s25 = smov 0  }
   0xe LB: > { %4985 = sst [smem:[#allocation5_spill]] %s4219_s18  ;;  %s3142_s26 = sadd.s32 4294967295, %s4247_s25   ;;  %s4247_s25 = sphi %s4345_s25, %s28_s25   ;;  %s4243_s24 = sphi %s4343_s24, %s5029_s24   ;;  %s4239_s23 = sphi %s4341_s23, %s5028_s23   ;;  %s4235_s22 = sphi %s4339_s22, %s5027_s22   ;;  %s4231_s21 = sphi %s4337_s21, %s5026_s21   ;;  %s4227_s20 = sphi %s4335_s20, %s5025_s20   ;;  %s4223_s19 = sphi %s4333_s19, %s5024_s19   ;;  %s4219_s18 = sphi %s4331_s18, %s5023_s18  }
   0xf   : > { %4986 = sst [smem:[#allocation6_spill]] %s4223_s19  ;;  %s3143_s27 = sadd.s32 4294967294, %s4247_s25  }
  0x10   : > { %4987 = sst [smem:[#allocation7_spill]] %s4227_s20  ;;  %s37_s28 = sadd.s32 1, %s4239_s23 }
  0x11   : > { %4988 = sst [smem:[#allocation8_spill]] %s4231_s21  ;;  %p38_p0 = scmp.ge.s32.totalorder %s37_s28, 2 }
  0x12   : > { %4989 = sst [smem:[#allocation9_spill]] %s4235_s22  ;;  %s40_s29 = sadd.s32 1, %s4243_s24 }
  0x13   : > { %4990 = sst [smem:[#allocation10_spill]] %s4239_s23  ;;  %p437_p1 = scmp.ne.s32.totalorder %s4227_s20, %s4223_s19 }
  0x14   : > { %4991 = sst [smem:[#allocation11_spill]] %s4243_s24  ;;  %p438_p2 = scmp.eq.s32.totalorder %s3142_s26, 3 }
  0x15   : > { %4992 = sst [smem:[#allocation12_spill]] %s4247_s25  ;;  %s5031_s28 = smov (%p38_p0, %s37_s28), 0 }
  0x16   : > { %4993 = sst [smem:[#allocation13_spill]] %s5031_s28  ;;  %s5033_s29 = smov (!%p38_p0, %s40_s29), %s4243_s24 }
  0x17   : > { %p4380_p3 = por %p438_p2, %p437_p1  ;;  %p443_p4 = scmp.ne.s32.totalorder %s4223_s19, %s4219_s18 }
  0x18   : > { %p42_p5 = scmp.ge.s32.totalorder %s5033_s29, 2  ;;  %p444_p6 = scmp.eq.s32.totalorder %s3143_s27, 3 }
  0x19   : > { %s4994_s30 = scalar_select %p4380_p3, 1, 0 }
  0x1a   : > { %p3146_p7 = scmp.ge.s32.totalorder %s4247_s25, 1  ;;  %p557_p8 = scmp.lt.s32.totalorder %s4247_s25, 5 }
  0x1b   : > { %4995 = sst [smem:[#allocation14_spill]] %s4994_s30  ;;  %s5035_s29 = smov (%p42_p5, %s5033_s29), 0 }
  0x1c   : > { %4996 = sst [smem:[#allocation15_spill]] %s5035_s29  ;;  %p4390_p9 = por %p444_p6, %p443_p4 }
  0x1d   : > { %p558_p10 = pnand %p3146_p7, %p557_p8  ;;  %s424_s17 = ssub.s32 %s4243_s24, %s5035_s29 }
  0x1e   : > { %s4997_s16 = scalar_select %p4390_p9, 1, 0 }
  0x1f   : > { %s427_s26 = sadd.s32 1, %s4227_s20  ;;  %p425_p11 = scmp.eq.s32.totalorder %s424_s17, 0 }
  0x20   : > { %4998 = sst [smem:[#allocation16_spill]] %s4997_s16  ;;  %561 = sbr.rel (%p558_p10) target bundleno = 2055 (0x807), region = 80 }
  0x21   : > { %s4398_s28 = scalar_select %p425_p11, %s4227_s20, %s427_s26  }
  0x22   : > { %s4967_s27 = sand.u32 (!%p558_p10), 1, %s4223_s19   ;;  %p650_p12 = scmp.lt.s32.totalorder (!%p558_p10), %s4235_s22, 1 }
  0x23   : > { %4999 = sst [smem:[#allocation17_spill]] %s4398_s28  ;;  %s3147_s23 = sshll.u32 (!%p558_p10), %s4967_s27, 3 }
  0x24   : > { %p654_p13 = scmp.lt.s32.totalorder (!%p558_p10), %s4231_s21, 1  ;;  %s5000_s0 = sld [smem:[#allocation18_spill]] (!%p558_p10) }
  0x25   : > { %s651_s18 = scalar_select %p650_p12, %s4235_s22, 1 }
  0x26   : > { %s4407_s16 = scalar_select %p654_p13, %s4231_s21, 1 }
  0x27   : > { %s3148_s17 = sshll.u32 %s651_s18, 3  ;;  %s5001_s3 = sld [smem:[#allocation19_spill]] }
  0x28   : > { %s4026_s19 = smul.u32 768, %s4407_s16  ;;  %s3855_s14 = sshll.u32 %s4407_s16, 6 }
  0x29   : > { %s4027_s22 = smul.u32 12, %s4407_s16  ;;  %s5002_s5 = sld [smem:[#allocation21_spill]] }
  0x2a   : > { %s653_s24 = scalar_lea.vmem %s5000_s0, %s3148_s17  ;;  %s5003_s4 = sld [smem:[#allocation20_spill]] }
  0x2b   : > { %s3856_s12 = sshll.u32 %s4407_s16, 8  ;;  %s5004_s21 = sld [smem:[#allocation22_spill]] }
  0x2c   : > { %s4455_s28 = scalar_lea.vmem %s4955_s9, %s3856_s12  ;;  %s4465_s0 = scalar_lea.vmem %s4957_s11, %s3856_s12 }
  0x2d   : > { %s4426_s18 = scalar_lea.vmem %s5001_s3, %s4026_s19  ;;  %s4471_s13 = scalar_lea.vmem [#allocation2], %s3147_s23 }
  0x2f   : > { %s4431_s17 = scalar_lea.vmem %s5002_s5, %s3855_s14  ;;  %s3154_s14 = sshll.u32 %s4407_s16, 2 }
  0x30   : > { %s4436_s26 = scalar_lea.vmem %s5003_s4, %s4027_s22  ;;  %s4460_s15 = scalar_lea.vmem %s4956_s10, %s3154_s14 }
  0x31   : > { %s699_s3 = scalar_lea.vmem %s5004_s21, %s4407_s16  ;;  %s5005_s4 = sld [smem:[#allocation8_spill]] }
  0x37   : > { %p3157_p0 = scmp.ne.s32.totalorder %s5005_s4, 0 }
  0x39   : > { %704 = sbr.rel (%p3157_p0) target bundleno = 64 (0x40), region = 84 }
  0x3e   : > { %v705_v0 = vld [vmem:[%s653_s24] sm:$0xff] }
  0x3f   : > { %706 = vst [vmem:[%s4471_s13] sm:$0xff] %v705_v0 }
  0x40 PF: > { %v4249_v2 = vmov 128.0   ;;  %v3865_v3 = vld [vmem:[%s4426_s18 + $0x38] sm:$0xff]  ;;  %v3864_v7 = vld [vmem:[%s4426_s18 + $0x30] sm:$0xff]  ;;  %v3863_v12 = vld [vmem:[%s4426_s18 + $0x28] sm:$0xff]  ;;  %s5006_s23 = scalar_lea.vmem %s4947_s1, %s4407_s16  ;;  %s5007_s12 = scalar_lea.vmem %s4948_s2, %s4407_s16  ;;  %vm1718_vm4 = vcmask 261120   ;;  %vm1837_vm6 = vcmask 64512  }
  0x41   : > { %4119 = vrcp.f32 %v4249_v2  ;;  %v3873_v4 = vld [vmem:[%s4426_s18 + $0x78] sm:$0xff]  ;;  %1034 = vmatpush.bf16.msra.mxu0 %v3865_v3  ;;  %v3872_v8 = vld [vmem:[%s4426_s18 + $0x70] sm:$0xff]  ;;  %v3871_v13 = vld [vmem:[%s4426_s18 + $0x68] sm:$0xff]  ;;  %s5010_s25 = scalar_lea.vmem %s4954_s8, %s4407_s16  ;;  %s5012_s19 = sld [smem:[#allocation8_spill]] }
  0x42   : > { %v3881_v5 = vld [vmem:[%s4426_s18 + $0xb8] sm:$0xff]  ;;  %1095 = vmatpush.bf16.msra.mxu1 %v3873_v4  ;;  %v3880_v9 = vld [vmem:[%s4426_s18 + $0xb0] sm:$0xff]  ;;  %v3879_v15 = vld [vmem:[%s4426_s18 + $0xa8] sm:$0xff] }
  0x43   : > { %v3889_v6 = vld [vmem:[%s4426_s18 + $0xf8] sm:$0xff]  ;;  %1156 = vmatpush.bf16.msra.mxu2 %v3881_v5  ;;  %v3888_v10 = vld [vmem:[%s4426_s18 + $0xf0] sm:$0xff]  ;;  %v3887_v16 = vld [vmem:[%s4426_s18 + $0xe8] sm:$0xff] }
  0x44   : > { %1217 = vmatpush.bf16.msra.mxu3 %v3889_v6  ;;  %v3862_v17 = vld [vmem:[%s4426_s18 + $0x20] sm:$0xff]  ;;  %v3861_v22 = vld [vmem:[%s4426_s18 + $0x18] sm:$0xff]  ;;  %v3860_v27 = vld [vmem:[%s4426_s18 + $0x10] sm:$0xff] }
  0x45   : > { %1035 = vmatpush.bf16.msra.mxu0 %v3864_v7  ;;  %v3870_v18 = vld [vmem:[%s4426_s18 + $0x60] sm:$0xff]  ;;  %v3869_v23 = vld [vmem:[%s4426_s18 + $0x58] sm:$0xff]  ;;  %v3868_v28 = vld [vmem:[%s4426_s18 + $0x50] sm:$0xff] }
  0x46   : > { %v4476_v1 = vld [vmem:[%s4471_s13] sm:$0xff]  ;;  %1096 = vmatpush.bf16.msra.mxu1 %v3872_v8  ;;  %v3877_v25 = vld [vmem:[%s4426_s18 + $0x98] sm:$0xff]  ;;  %v3876_v30 = vld [vmem:[%s4426_s18 + $0x90] sm:$0xff] }
  0x47   : > { %710 = vadd.xlane.f32.xlu0 %v4476_v1  ;;  %v4120_v11 = vpop.eup %4119  ;;  %1157 = vmatpush.bf16.msra.mxu2 %v3880_v9  ;;  %v3878_v20 = vld [vmem:[%s4426_s18 + $0xa0] sm:$0xff]  ;;  %v3885_v26 = vld [vmem:[%s4426_s18 + $0xd8] sm:$0xff]  ;;  %v3884_v31 = vld [vmem:[%s4426_s18 + $0xd0] sm:$0xff]  ;;  %p3850_p1 = scmp.ne.s32.totalorder %s5012_s19, 1 }
  0x48   : > { %v713_v14 = vmul.f32 128.0, %v4120_v11  ;;  %1218 = vmatpush.bf16.msra.mxu3 %v3888_v10  ;;  %v3886_v21 = vld [vmem:[%s4426_s18 + $0xe0] sm:$0xff]  ;;  %vm717_vm0 = vweird.f32 %v4120_v11  ;;  %v3859_v32 = vld [vmem:[%s4426_s18 + $0x8] sm:$0xff]  ;;  %v3897_v45 = vld [vmem:[%s4426_s18 + $0x138] sm:$0xff]  ;;  %s5013_s21 = sld [smem:[#allocation23_spill]] (!%p3850_p1) }
  0x49   : > { %1036 = vmatpush.bf16.msra.mxu0 %v3863_v12  ;;  %v3867_v33 = vld [vmem:[%s4426_s18 + $0x48] sm:$0xff]  ;;  %v3858_v41 = vld [vmem:[%s4426_s18] sm:$0xff]  ;;  %v3905_v46 = vld [vmem:[%s4426_s18 + $0x178] sm:$0xff] }
  0x4a   : > { %1097 = vmatpush.bf16.msra.mxu1 %v3871_v13  ;;  %v714_v19 = vsub.f32 1.0, %v713_v14  ;;  %v3875_v35 = vld [vmem:[%s4426_s18 + $0x88] sm:$0xff]  ;;  %v3866_v42 = vld [vmem:[%s4426_s18 + $0x40] sm:$0xff]  ;;  %v3913_v47 = vld [vmem:[%s4426_s18 + $0x1b8] sm:$0xff] }
  0x4b   : > { %1158 = vmatpush.bf16.msra.mxu2 %v3879_v15  ;;  %v3883_v36 = vld [vmem:[%s4426_s18 + $0xc8] sm:$0xff]  ;;  %v3874_v43 = vld [vmem:[%s4426_s18 + $0x80] sm:$0xff]  ;;  %v3921_v48 = vld [vmem:[%s4426_s18 + $0x1f8] sm:$0xff] }
  0x4c   : > { %1219 = vmatpush.bf16.msra.mxu3 %v3887_v16  ;;  %v715_v24 = vmul.f32 %v4120_v11, %v714_v19  ;;  %v3882_v44 = vld [vmem:[%s4426_s18 + $0xc0] sm:$0xff]  ;;  %v3896_v49 = vld [vmem:[%s4426_s18 + $0x130] sm:$0xff]  ;;  %v3895_v53 = vld [vmem:[%s4426_s18 + $0x128] sm:$0xff] }
  0x4d   : > { %1037 = vmatpush.bf16.msra.mxu0 %v3862_v17  ;;  %v3904_v50 = vld [vmem:[%s4426_s18 + $0x170] sm:$0xff]  ;;  %v3903_v54 = vld [vmem:[%s4426_s18 + $0x168] sm:$0xff]  ;;  %v3894_v57 = vld [vmem:[%s4426_s18 + $0x120] sm:$0xff] }
  0x4e   : > { %1098 = vmatpush.bf16.msra.mxu1 %v3870_v18  ;;  %v716_v29 = vadd.f32 %v4120_v11, %v715_v24  ;;  %v3912_v51 = vld [vmem:[%s4426_s18 + $0x1b0] sm:$0xff]  ;;  %v3911_v55 = vld [vmem:[%s4426_s18 + $0x1a8] sm:$0xff]  ;;  %v3902_v58 = vld [vmem:[%s4426_s18 + $0x160] sm:$0xff] }
  0x4f   : > { %1159 = vmatpush.bf16.msra.mxu2 %v3878_v20  ;;  %v3920_v52 = vld [vmem:[%s4426_s18 + $0x1f0] sm:$0xff]  ;;  %v3919_v56 = vld [vmem:[%s4426_s18 + $0x1e8] sm:$0xff]  ;;  %v3910_v59 = vld [vmem:[%s4426_s18 + $0x1a0] sm:$0xff] }
  0x50   : > { %1220 = vmatpush.bf16.msra.mxu3 %v3886_v21  ;;  %v4505_v34 = vsel %vm717_vm0, %v4120_v11, %v716_v29  ;;  %v3918_v60 = vld [vmem:[%s4426_s18 + $0x1e0] sm:$0xff]  ;;  %v3893_v61 = vld [vmem:[%s4426_s18 + $0x118] sm:$0xff]  ;;  %v3892_v2 = vld [vmem:[%s4426_s18 + $0x110] sm:$0xff] }
  0x51   : > { %1038 = vmatpush.bf16.msra.mxu0 %v3861_v22  ;;  %v3901_v62 = vld [vmem:[%s4426_s18 + $0x158] sm:$0xff]  ;;  %v3900_v3 = vld [vmem:[%s4426_s18 + $0x150] sm:$0xff]  ;;  %v3891_v6 = vld [vmem:[%s4426_s18 + $0x108] sm:$0xff] }
  0x52   : > { %1099 = vmatpush.bf16.msra.mxu1 %v3869_v23  ;;  %v3909_v63 = vld [vmem:[%s4426_s18 + $0x198] sm:$0xff]  ;;  %v3908_v4 = vld [vmem:[%s4426_s18 + $0x190] sm:$0xff]  ;;  %v3899_v7 = vld [vmem:[%s4426_s18 + $0x148] sm:$0xff] }
  0x53   : > { %1160 = vmatpush.bf16.msra.mxu2 %v3877_v25  ;;  %v3917_v0 = vld [vmem:[%s4426_s18 + $0x1d8] sm:$0xff]  ;;  %v3916_v5 = vld [vmem:[%s4426_s18 + $0x1d0] sm:$0xff]  ;;  %v3907_v8 = vld [vmem:[%s4426_s18 + $0x188] sm:$0xff] }
  0x54   : > { %1221 = vmatpush.bf16.msra.mxu3 %v3885_v26  ;;  %v3915_v9 = vld [vmem:[%s4426_s18 + $0x1c8] sm:$0xff]  ;;  %v3890_v10 = vld [vmem:[%s4426_s18 + $0x100] sm:$0xff] }
  0x55   : > { %1039 = vmatpush.bf16.msra.mxu0 %v3860_v27  ;;  %v3898_v11 = vld [vmem:[%s4426_s18 + $0x140] sm:$0xff] }
  0x56   : > { %1100 = vmatpush.bf16.msra.mxu1 %v3868_v28  ;;  %v3906_v12 = vld [vmem:[%s4426_s18 + $0x180] sm:$0xff] }
  0x57   : > { %1161 = vmatpush.bf16.msra.mxu2 %v3876_v30  ;;  %v3914_v13 = vld [vmem:[%s4426_s18 + $0x1c0] sm:$0xff]  ;;  %v3929_v30 = vld [vmem:[%s4426_s18 + $0x238] sm:$0xff] }
  0x58   : > { %1222 = vmatpush.bf16.msra.mxu3 %v3884_v31  ;;  %v4101_v23 = vld [vmem:[%s5006_s23] ss:$0 sm:$0xff]  ;;  %v3937_v31 = vld [vmem:[%s4426_s18 + $0x278] sm:$0xff]  ;;  %s5014_s23 = sld [smem:[#allocation24_spill]] (!%p3850_p1) }
  0x59   : > { %1040 = vmatpush.bf16.msra.mxu0 %v3859_v32  ;;  %v4102_v25 = vld [vmem:[%s5007_s12] ss:$0 sm:$0xff]  ;;  %v3945_v32 = vld [vmem:[%s4426_s18 + $0x2b8] sm:$0xff] }
  0x5a   : > { %1101 = vmatpush.bf16.msra.mxu1 %v3867_v33  ;;  %v3953_v33 = vld [vmem:[%s4426_s18 + $0x2f8] sm:$0xff] }
  0x5b   : > { %1162 = vmatpush.bf16.msra.mxu2 %v3875_v35  ;;  %v3928_v35 = vld [vmem:[%s4426_s18 + $0x230] sm:$0xff] }
  0x5c   : > { %1223 = vmatpush.bf16.msra.mxu3 %v3883_v36  ;;  %v3936_v36 = vld [vmem:[%s4426_s18 + $0x270] sm:$0xff] }
  0x5d   : > { %1041 = vmatpush.bf16.msra.mxu0 %v3858_v41  ;;  %v3943_v41 = vld [vmem:[%s4426_s18 + $0x2a8] sm:$0xff] }
  0x5e   : > { %1102 = vmatpush.bf16.msra.mxu1 %v3866_v42  ;;  %v3951_v42 = vld [vmem:[%s4426_s18 + $0x2e8] sm:$0xff] }
  0x5f   : > { %1163 = vmatpush.bf16.msra.mxu2 %v3874_v43  ;;  %v3926_v43 = vld [vmem:[%s4426_s18 + $0x220] sm:$0xff] }
  0x60   : > { %1224 = vmatpush.bf16.msra.mxu3 %v3882_v44  ;;  %v3934_v44 = vld [vmem:[%s4426_s18 + $0x260] sm:$0xff] }
  0x61   : > { %1278 = vmatpush.bf16.msrb.mxu0 %v3897_v45  ;;  %v3942_v45 = vld [vmem:[%s4426_s18 + $0x2a0] sm:$0xff] }
  0x62   : > { %1339 = vmatpush.bf16.msrb.mxu1 %v3905_v46  ;;  %v3950_v46 = vld [vmem:[%s4426_s18 + $0x2e0] sm:$0xff] }
  0x63   : > { %1400 = vmatpush.bf16.msrb.mxu2 %v3913_v47  ;;  %v3925_v47 = vld [vmem:[%s4426_s18 + $0x218] sm:$0xff] }
  0x64   : > { %1461 = vmatpush.bf16.msrb.mxu3 %v3921_v48  ;;  %v3933_v48 = vld [vmem:[%s4426_s18 + $0x258] sm:$0xff] }
  0x65   : > { %1279 = vmatpush.bf16.msrb.mxu0 %v3896_v49  ;;  %v3941_v49 = vld [vmem:[%s4426_s18 + $0x298] sm:$0xff] }
  0x66   : > { %1340 = vmatpush.bf16.msrb.mxu1 %v3904_v50  ;;  %v3949_v50 = vld [vmem:[%s4426_s18 + $0x2d8] sm:$0xff] }
  0x67   : > { %1401 = vmatpush.bf16.msrb.mxu2 %v3912_v51  ;;  %v3924_v51 = vld [vmem:[%s4426_s18 + $0x210] sm:$0xff] }
  0x68   : > { %1462 = vmatpush.bf16.msrb.mxu3 %v3920_v52  ;;  %v3932_v52 = vld [vmem:[%s4426_s18 + $0x250] sm:$0xff] }
  0x69   : > { %1280 = vmatpush.bf16.msrb.mxu0 %v3895_v53  ;;  %v3940_v53 = vld [vmem:[%s4426_s18 + $0x290] sm:$0xff] }
  0x6a   : > { %1341 = vmatpush.bf16.msrb.mxu1 %v3903_v54  ;;  %v3948_v54 = vld [vmem:[%s4426_s18 + $0x2d0] sm:$0xff] }
  0x6b   : > { %1402 = vmatpush.bf16.msrb.mxu2 %v3911_v55  ;;  %v3923_v55 = vld [vmem:[%s4426_s18 + $0x208] sm:$0xff] }
  0x6c   : > { %1463 = vmatpush.bf16.msrb.mxu3 %v3919_v56  ;;  %v3931_v56 = vld [vmem:[%s4426_s18 + $0x248] sm:$0xff] }
  0x6d   : > { %1281 = vmatpush.bf16.msrb.mxu0 %v3894_v57  ;;  %v3939_v57 = vld [vmem:[%s4426_s18 + $0x288] sm:$0xff] }
  0x6e   : > { %1342 = vmatpush.bf16.msrb.mxu1 %v3902_v58  ;;  %v3947_v58 = vld [vmem:[%s4426_s18 + $0x2c8] sm:$0xff] }
  0x6f   : > { %1403 = vmatpush.bf16.msrb.mxu2 %v3910_v59  ;;  %v3922_v59 = vld [vmem:[%s4426_s18 + $0x200] sm:$0xff] }
  0x70   : > { %1464 = vmatpush.bf16.msrb.mxu3 %v3918_v60  ;;  %v3930_v60 = vld [vmem:[%s4426_s18 + $0x240] sm:$0xff] }
  0x71   : > { %1282 = vmatpush.bf16.msrb.mxu0 %v3893_v61  ;;  %v3938_v61 = vld [vmem:[%s4426_s18 + $0x280] sm:$0xff] }
  0x72   : > { %1343 = vmatpush.bf16.msrb.mxu1 %v3901_v62  ;;  %v3946_v62 = vld [vmem:[%s4426_s18 + $0x2c0] sm:$0xff] }
  0x73   : > { %1404 = vmatpush.bf16.msrb.mxu2 %v3909_v63 }
  0x74   : > { %1465 = vmatpush.bf16.msrb.mxu3 %v3917_v0 }
  0x75   : > { %1283 = vmatpush.bf16.msrb.mxu0 %v3892_v2 }
  0x76   : > { %1344 = vmatpush.bf16.msrb.mxu1 %v3900_v3 }
  0x77   : > { %1405 = vmatpush.bf16.msrb.mxu2 %v3908_v4 }
  0x78   : > { %1466 = vmatpush.bf16.msrb.mxu3 %v3916_v5 }
  0x79   : > { %1284 = vmatpush.bf16.msrb.mxu0 %v3891_v6  ;;  %v4107_v6 = vld [vmem:[%s4436_s26 + $0x4] ss:$0 sm:$0xff] }
  0x7a   : > { %1345 = vmatpush.bf16.msrb.mxu1 %v3899_v7  ;;  %v4108_v7 = vld [vmem:[%s4436_s26 + $0x5] ss:$0 sm:$0xff] }
  0x7b   : > { %1406 = vmatpush.bf16.msrb.mxu2 %v3907_v8 }
  0x7c   : > { %1467 = vmatpush.bf16.msrb.mxu3 %v3915_v9 }
  0x7d   : > { %1285 = vmatpush.bf16.msrb.mxu0 %v3890_v10  ;;  %v4103_v10 = vld [vmem:[%s4436_s26] ss:$0 sm:$0xff] }
  0x7e   : > { %1346 = vmatpush.bf16.msrb.mxu1 %v3898_v11  ;;  %v4104_v11 = vld [vmem:[%s4436_s26 + $0x1] ss:$0 sm:$0xff] }
  0x7f   : > { %1407 = vmatpush.bf16.msrb.mxu2 %v3906_v12 }
  0x80   : > { %1468 = vmatpush.bf16.msrb.mxu3 %v3914_v13 }
  0xba   : > { %v711_v37 = vpop.xlane.xlu0 %710 }
  0xbb   : > { %v719_v38 = vmul.f32 %v4505_v34, %v711_v37  ;;  %v3944_v37 = vld [vmem:[%s4426_s18 + $0x2b0] sm:$0xff] }
  0xbd   : > { %v4511_v39 = vsub.f32 %v4476_v1, %v719_v38  ;;  %v3952_v38 = vld [vmem:[%s4426_s18 + $0x2f0] sm:$0xff] }
  0xbf   : > { %v721_v40 = vmul.f32 %v4511_v39, %v4511_v39 }
  0xc1   : > { %722 = vadd.xlane.f32.xlu0 %v721_v40  ;;  %v3935_v40 = vld [vmem:[%s4426_s18 + $0x268] sm:$0xff] }
 0x134   : > { %v723_v14 = vpop.xlane.xlu0 %722 }
 0x135   : > { %v724_v15 = vmul.f32 %v723_v14, %v4505_v34 }
 0x137   : > { %v725_v16 = vadd.f32 1e-05, %v724_v15 }
 0x139   : > { %4121 = vrsqrt.f32 %v725_v16  ;;  %vm732_vm2 = vweird.f32 %v725_v16 }
 0x13f   : > { %v4122_v17 = vpop.eup %4121 }
 0x140   : > { %v727_v18 = vmul.f32 %v4122_v17, %v725_v16  ;;  %vm733_vm1 = vweird.f32 %v4122_v17 }
 0x141   : > { %vm734_vm3 = vmor %vm732_vm2, %vm733_vm1 }
 0x142   : > { %v728_v19 = vmul.f32 %v4122_v17, %v727_v18  ;;  %v4109_v18 = vld [vmem:[%s4436_s26 + $0x6] ss:$0 sm:$0xff] }
 0x144   : > { %v729_v20 = vmul.f32 0.5, %v728_v19  ;;  %v4110_v19 = vld [vmem:[%s4436_s26 + $0x7] ss:$0 sm:$0xff] }
 0x146   : > { %v730_v21 = vsub.f32 1.5, %v729_v20  ;;  %v4105_v20 = vld [vmem:[%s4436_s26 + $0x2] ss:$0 sm:$0xff] }
 0x148   : > { %v731_v22 = vmul.f32 %v4122_v17, %v730_v21  ;;  %v4106_v21 = vld [vmem:[%s4436_s26 + $0x3] ss:$0 sm:$0xff] }
 0x14a   : > { %v735_v24 = vsel %vm734_vm3, %v4122_v17, %v731_v22 }
 0x14b   : > { %v736_v26 = vmul.f32 %v735_v24, %v4511_v39  ;;  %v3927_v39 = vld [vmem:[%s4426_s18 + $0x228] sm:$0xff] }
 0x14d   : > { %v740_v27 = vmul.f32 %v4101_v23, %v736_v26 }
 0x14f   : > { %v744_v28 = vadd.f32 %v4102_v25, %v740_v27 }
 0x151   : > { %v4563_v29 = vpack.c.bf16 %v744_v28, %v744_v28 }
 0x153   : > { %1042 = vmatmul.bf16.vlgmr.msra.gmra.mxu0 %v4563_v29  ;;  %1103 = vmatmul.bf16.vlgmr.msra.gmra.mxu1 %v4563_v29 }
 0x154   : > { %1164 = vmatmul.bf16.vlgmr.msra.gmra.mxu2 %v4563_v29  ;;  %1225 = vmatmul.bf16.vlgmr.msra.gmra.mxu3 %v4563_v29 }
 0x155   : > { %1522 = vmatpush.bf16.msra.mxu0 %v3929_v30  ;;  %1583 = vmatpush.bf16.msra.mxu1 %v3937_v31  ;;  %v4111_v30 = vld [vmem:[%s4436_s26 + $0x8] ss:$0 sm:$0xff]  ;;  %v4112_v31 = vld [vmem:[%s4436_s26 + $0x9] ss:$0 sm:$0xff] }
 0x156   : > { %1644 = vmatpush.bf16.msra.mxu2 %v3945_v32  ;;  %1705 = vmatpush.bf16.msra.mxu3 %v3953_v33 }
 0x159   : > { %1523 = vmatpush.bf16.msra.mxu0 %v3928_v35  ;;  %1584 = vmatpush.bf16.msra.mxu1 %v3936_v36 }
 0x15a   : > { %1645 = vmatpush.bf16.msra.mxu2 %v3944_v37  ;;  %1706 = vmatpush.bf16.msra.mxu3 %v3952_v38 }
 0x15d   : > { %1524 = vmatpush.bf16.msra.mxu0 %v3927_v39  ;;  %1585 = vmatpush.bf16.msra.mxu1 %v3935_v40  ;;  %v4113_v39 = vld [vmem:[%s4436_s26 + $0xa] ss:$0 sm:$0xff]  ;;  %v4114_v40 = vld [vmem:[%s4436_s26 + $0xb] ss:$0 sm:$0xff]  ;;  %s5008_s26 = scalar_lea.vmem %s4952_s6, %s4407_s16 }
 0x15e   : > { %1646 = vmatpush.bf16.msra.mxu2 %v3943_v41  ;;  %1707 = vmatpush.bf16.msra.mxu3 %v3951_v42 }
 0x161   : > { %1525 = vmatpush.bf16.msra.mxu0 %v3926_v43  ;;  %1586 = vmatpush.bf16.msra.mxu1 %v3934_v44 }
 0x162   : > { %1647 = vmatpush.bf16.msra.mxu2 %v3942_v45  ;;  %1708 = vmatpush.bf16.msra.mxu3 %v3950_v46 }
 0x163   : > { %1286 = vmatmul.bf16.vlgmr.msrb.gmra.mxu0 %v4563_v29  ;;  %1347 = vmatmul.bf16.vlgmr.msrb.gmra.mxu1 %v4563_v29 }
 0x164   : > { %1408 = vmatmul.bf16.vlgmr.msrb.gmra.mxu2 %v4563_v29  ;;  %1469 = vmatmul.bf16.vlgmr.msrb.gmra.mxu3 %v4563_v29 }
 0x165   : > { %1526 = vmatpush.bf16.msra.mxu0 %v3925_v47  ;;  %1587 = vmatpush.bf16.msra.mxu1 %v3933_v48 }
 0x166   : > { %1648 = vmatpush.bf16.msra.mxu2 %v3941_v49  ;;  %1709 = vmatpush.bf16.msra.mxu3 %v3949_v50  ;;  %v1827_v49 = vlaneseq }
 0x168   : > { %v1828_v50 = vshrl.u32 %v1827_v49, 7 }
 0x169   : > { %1527 = vmatpush.bf16.msra.mxu0 %v3924_v51  ;;  %1588 = vmatpush.bf16.msra.mxu1 %v3932_v52  ;;  %v1830_v51 = vand.u32 127, %v1827_v49 }
 0x16a   : > { %1649 = vmatpush.bf16.msra.mxu2 %v3940_v53  ;;  %1710 = vmatpush.bf16.msra.mxu3 %v3948_v54  ;;  %v4250_v53 = vmov 0.0  }
 0x16b   : > { %vm1831_vm5 = vcmp.gt.s32.totalorder %v1830_v51, %v1828_v50 }
 0x16c   : > { %v1832_v54 = vsel %vm1831_vm5, -1e+30, %v4250_v53 }
 0x16d   : > { %1528 = vmatpush.bf16.msra.mxu0 %v3923_v55  ;;  %1589 = vmatpush.bf16.msra.mxu1 %v3931_v56 }
 0x16e   : > { %1650 = vmatpush.bf16.msra.mxu2 %v3939_v57  ;;  %1711 = vmatpush.bf16.msra.mxu3 %v3947_v58 }
 0x171   : > { %1529 = vmatpush.bf16.msra.mxu0 %v3922_v59  ;;  %1590 = vmatpush.bf16.msra.mxu1 %v3930_v60 }
 0x172   : > { %1651 = vmatpush.bf16.msra.mxu2 %v3938_v61  ;;  %1712 = vmatpush.bf16.msra.mxu3 %v3946_v62 }
 0x174   : > { %1530 = vmatmul.bf16.vlgmr.msra.gmra.mxu0 %v4563_v29  ;;  %1591 = vmatmul.bf16.vlgmr.msra.gmra.mxu1 %v4563_v29 }
 0x175   : > { %1652 = vmatmul.bf16.vlgmr.msra.gmra.mxu2 %v4563_v29  ;;  %1713 = vmatmul.bf16.vlgmr.msra.gmra.mxu3 %v4563_v29 }
 0x1d0   : > { %v1043_v63 = vpop.f32.mrf.mxu0  ;;  %v1104_v0 = vpop.f32.mrf.mxu1 }
 0x1d1   : > { %v1044_v16 = vadd.f32 %v4103_v10, %v1043_v63  ;;  %v1105_v17 = vadd.f32 %v4104_v11, %v1104_v0 }
 0x1d7   : > { %v1165_v2 = vpop.f32.mrf.mxu2  ;;  %v1226_v3 = vpop.f32.mrf.mxu3 }
 0x1d8   : > { %v1045_v4 = vpop.f32.mrf.mxu0  ;;  %v1106_v5 = vpop.f32.mrf.mxu1  ;;  %v1166_v28 = vadd.f32 %v4105_v20, %v1165_v2  ;;  %v1227_v29 = vadd.f32 %v4106_v21, %v1226_v3 }
 0x1df   : > { %v1167_v8 = vpop.f32.mrf.mxu2  ;;  %v1228_v9 = vpop.f32.mrf.mxu3 }
 0x1e0   : > { %v1287_v12 = vpop.f32.mrf.mxu0  ;;  %v1348_v13 = vpop.f32.mrf.mxu1 }
 0x1e1   : > { %v1288_v14 = vadd.f32 %v4107_v6, %v1287_v12  ;;  %v1349_v15 = vadd.f32 %v4108_v7, %v1348_v13 }
 0x1e3   : > { %3542 = vmatpush.xpose.msk.msrb.mxu0 %vm1718_vm4, %v1288_v14  ;;  %3544 = vmatpush.xpose.msk.msrb.mxu1 %vm1718_vm4, %v1349_v15 }
 0x1e6   : > { %3543 = vmatmul.msk.f32.vlgmr.msrb.gmra.mxu0 %vm1718_vm4, %v1044_v16  ;;  %3545 = vmatmul.msk.f32.vlgmr.msrb.gmra.mxu1 %vm1718_vm4, %v1105_v17 }
 0x1e7   : > { %v1409_v22 = vpop.f32.mrf.mxu2  ;;  %v1470_v23 = vpop.f32.mrf.mxu3 }
 0x1e8   : > { %v1410_v24 = vadd.f32 %v4109_v18, %v1409_v22  ;;  %v1471_v25 = vadd.f32 %v4110_v19, %v1470_v23  ;;  %v1289_v26 = vpop.f32.mrf.mxu0  ;;  %v1350_v27 = vpop.f32.mrf.mxu1 }
 0x1ea   : > { %3546 = vmatpush.xpose.msk.msrb.mxu2 %vm1718_vm4, %v1410_v24  ;;  %3548 = vmatpush.xpose.msk.msrb.mxu3 %vm1718_vm4, %v1471_v25 }
 0x1ed   : > { %3547 = vmatmul.msk.f32.vlgmr.msrb.gmra.mxu2 %vm1718_vm4, %v1166_v28  ;;  %3549 = vmatmul.msk.f32.vlgmr.msrb.gmra.mxu3 %vm1718_vm4, %v1227_v29  ;;  %v3955_v28 = vld [vmem:[%s4431_s17 + $0x8] sm:$0xff] }
 0x1ef   : > { %v1411_v32 = vpop.f32.mrf.mxu2  ;;  %v1472_v33 = vpop.f32.mrf.mxu3 }
 0x1f1   : > { %v1531_v35 = vpop.f32.mrf.mxu0  ;;  %v1592_v36 = vpop.f32.mrf.mxu1 }
 0x1f2   : > { %v1532_v37 = vadd.f32 %v4111_v30, %v1531_v35  ;;  %v1593_v38 = vadd.f32 %v4112_v31, %v1592_v36 }
 0x1f4   : > { %1900 = vmatpush.msra.mxu0 %v1532_v37  ;;  %1923 = vmatpush.msra.mxu1 %v1593_v38 }
 0x1f6   : > { %2015 = vmatpush.bf16.msrb.mxu0 %v3955_v28  ;;  %v3989_v28 = vld [vmem:[%s4455_s28 + $0xd4] sm:$0xf0] }
 0x1f8   : > { %v1653_v41 = vpop.f32.mrf.mxu2  ;;  %v1714_v42 = vpop.f32.mrf.mxu3 }
 0x1f9   : > { %v1654_v43 = vadd.f32 %v4113_v39, %v1653_v41  ;;  %v1715_v44 = vadd.f32 %v4114_v40, %v1714_v42  ;;  %v1533_v45 = vpop.f32.mrf.mxu0  ;;  %v1594_v46 = vpop.f32.mrf.mxu1  ;;  %v3954_v41 = vld [vmem:[%s4431_s17] sm:$0xff]  ;;  %v3959_v42 = vld [vmem:[%s4431_s17 + $0x28] sm:$0xff] }
 0x1fa   : > { %2016 = vmatpush.bf16.msrb.mxu0 %v3954_v41  ;;  %v3956_v45 = vld [vmem:[%s4431_s17 + $0x10] sm:$0xff]  ;;  %v3961_v46 = vld [vmem:[%s4431_s17 + $0x38] sm:$0xff] }
 0x1fb   : > { %1946 = vmatpush.msra.mxu2 %v1654_v43  ;;  %1969 = vmatpush.msra.mxu3 %v1715_v44  ;;  %v3957_v43 = vld [vmem:[%s4431_s17 + $0x18] sm:$0xff]  ;;  %v3958_v44 = vld [vmem:[%s4431_s17 + $0x20] sm:$0xff] }
 0x1fc   : > { %2043 = vmatpush.bf16.msrb.mxu1 %v3957_v43  ;;  %v3985_v41 = vld [vmem:[%s4455_s28 + $0xb4] sm:$0xf0] }
 0x1fd   : > { %2071 = vmatpush.bf16.msrb.mxu2 %v3959_v42  ;;  %2099 = vmatpush.bf16.msrb.mxu3 %v3961_v46 }
 0x200   : > { %v1655_v47 = vpop.f32.mrf.mxu2  ;;  %v1716_v48 = vpop.f32.mrf.mxu3  ;;  %2044 = vmatpush.bf16.msrb.mxu1 %v3956_v45  ;;  %v3682_v45 = vld [vmem:[%s4455_s28 + $0xb8] sm:$0xf0] }
 0x201   : > { %2072 = vmatpush.bf16.msrb.mxu2 %v3958_v44  ;;  %v3960_v47 = vld [vmem:[%s4431_s17 + $0x30] sm:$0xff]  ;;  %v3983_v44 = vld [vmem:[%s4455_s28 + $0xac] sm:$0xf] }
 0x202   : > { %2100 = vmatpush.bf16.msrb.mxu3 %v3960_v47  ;;  %v3685_v46 = vor.u32 %v3983_v44, %v3682_v45  ;;  %v3656_v47 = vld [vmem:[%s4455_s28 + $0x80] sm:$0xf]  ;;  %v3602_v44 = vld [vmem:[%s4455_s28 + $0x18] sm:$0xf0] }
 0x263   : > { %v1742_v52 = vpop.f32.mrf.mxu0  ;;  %v1768_v56 = vpop.f32.mrf.mxu1 }
 0x264   : > { %v1823_v55 = vmul.f32 0.17677669, %v1742_v52  ;;  %v1824_v58 = vmul.f32 0.17677669, %v1768_v56 }
 0x266   : > { %v1833_v57 = vadd.f32 %v1832_v54, %v1823_v55  ;;  %v1834_v60 = vadd.f32 %v1832_v54, %v1824_v58 }
 0x268   : > { %v1838_v59 = vsel %vm1837_vm6, %v1833_v57, -inf  ;;  %v1841_v62 = vsel %vm1837_vm6, %v1834_v60, -inf }
 0x269   : > { %1839 = vmax.xlane.f32.xlu2 %v1838_v59 }
 0x270   : > { %v1794_v61 = vpop.f32.mrf.mxu2  ;;  %v1820_v0 = vpop.f32.mrf.mxu3 }
 0x271   : > { %v1825_v63 = vmul.f32 0.17677669, %v1794_v61  ;;  %1842 = vmax.xlane.f32.xlu2 %v1841_v62  ;;  %v1826_v3 = vmul.f32 0.17677669, %v1820_v0 }
 0x273   : > { %v1835_v2 = vadd.f32 %v1832_v54, %v1825_v63  ;;  %v1836_v5 = vadd.f32 %v1832_v54, %v1826_v3  ;;  %v4115_v63 = vld [vmem:[%s5008_s26] ss:$0 sm:$0xff] }
 0x275   : > { %v1844_v4 = vsel %vm1837_vm6, %v1835_v2, -inf  ;;  %v1847_v6 = vsel %vm1837_vm6, %v1836_v5, -inf }
 0x276   : > { %1845 = vmax.xlane.f32.xlu1 %v1844_v4 }
 0x27e   : > { %1848 = vmax.xlane.f32.xlu1 %v1847_v6 }
 0x2dc   : > { %v1840_v7 = vpop.xlane.xlu2 %1839 }
 0x2dd   : > { %v1850_v8 = vsub.f32 %v1833_v57, %v1840_v7  ;;  %v3704_v7 = vld [vmem:[%s4455_s28 + $0xe0] sm:$0xf] }
 0x2df   : > { %v1854_v9 = vmul.f32 1.442695, %v1850_v8  ;;  %v3992_v8 = vld [vmem:[%s4455_s28 + $0xec] sm:$0xf0] }
 0x2e1   : > { %4123 = vpow2.f32 %v1854_v9  ;;  %v3990_v9 = vld [vmem:[%s4455_s28 + $0xe4] sm:$0xf] }
 0x2e4   : > { %v1843_v12 = vpop.xlane.xlu2 %1842 }
 0x2e5   : > { %v1851_v15 = vsub.f32 %v1834_v60, %v1843_v12  ;;  %v3712_v12 = vld [vmem:[%s4455_s28 + $0xe8] sm:$0xf] }
 0x2e7   : > { %v4124_v10 = vpop.eup %4123  ;;  %v1856_v17 = vmul.f32 1.442695, %v1851_v15 }
 0x2e8   : > { %v1862_v11 = vsel %vm1837_vm6, %v4124_v10, 0.0 }
 0x2e9   : > { %v1846_v13 = vpop.xlane.xlu1 %1845  ;;  %1863 = vadd.xlane.f32.xlu2 %v1862_v11  ;;  %v3706_v11 = vld [vmem:[%s4455_s28 + $0xf0] sm:$0xf0] }
 0x2ea   : > { %v1852_v14 = vsub.f32 %v1835_v2, %v1846_v13  ;;  %v3993_v13 = vld [vmem:[%s4455_s28 + $0xf4] sm:$0xf0] }
 0x2eb   : > { %v3713_v15 = vor.u32 %v3993_v13, %v3712_v12  ;;  %v3626_v13 = vld [vmem:[%s4455_s28 + $0x50] sm:$0xf0] }
 0x2ec   : > { %v1858_v16 = vmul.f32 1.442695, %v1852_v14  ;;  %v3709_v14 = vor.u32 %v3990_v9, %v3706_v11  ;;  %v3624_v9 = vld [vmem:[%s4455_s28 + $0x40] sm:$0xf]  ;;  %v3970_v11 = vld [vmem:[%s4455_s28 + $0x44] sm:$0xf] }
 0x2ee   : > { %4125 = vpow2.f32 %v1858_v16  ;;  %v3991_v16 = vld [vmem:[%s4455_s28 + $0xec] sm:$0xf] }
 0x2ef   : > { %4127 = vpow2.f32 %v1856_v17  ;;  %v3714_v17 = vld [vmem:[%s4455_s28 + $0xf8] sm:$0xf0] }
 0x2f1   : > { %v1849_v18 = vpop.xlane.xlu1 %1848 }
 0x2f2   : > { %v1853_v19 = vsub.f32 %v1836_v5, %v1849_v18 }
 0x2f4   : > { %v4126_v20 = vpop.eup %4125  ;;  %v1860_v21 = vmul.f32 1.442695, %v1853_v19 }
 0x2f5   : > { %v1868_v22 = vsel %vm1837_vm6, %v4126_v20, 0.0  ;;  %v4128_v23 = vpop.eup %4127 }
 0x2f6   : > { %4129 = vpow2.f32 %v1860_v21  ;;  %1869 = vadd.xlane.f32.xlu0 %v1868_v22  ;;  %v1865_v26 = vsel %vm1837_vm6, %v4128_v23, 0.0  ;;  %v3688_v22 = vld [vmem:[%s4455_s28 + $0xc0] sm:$0xf] }
 0x2fc   : > { %v4130_v24 = vpop.eup %4129 }
 0x2fd   : > { %v1871_v25 = vsel %vm1837_vm6, %v4130_v24, 0.0 }
 0x2fe   : > { %1872 = vadd.xlane.f32.xlu1 %v1871_v25  ;;  %1866 = vadd.xlane.f32.xlu0 %v1865_v26  ;;  %v3690_v26 = vld [vmem:[%s4455_s28 + $0xd0] sm:$0xf0] }
 0x35c   : > { %v1864_v27 = vpop.xlane.xlu2 %1863 }
 0x35d   : > { %4131 = vrcp.f32 %v1864_v27  ;;  %v3696_v27 = vld [vmem:[%s4455_s28 + $0xc8] sm:$0xf] }
 0x363   : > { %v4132_v29 = vpop.eup %4131 }
 0x364   : > { %v1878_v30 = vmul.f32 %v4132_v29, %v4124_v10  ;;  %v3705_v10 = vor.u32 %v3992_v8, %v3704_v7  ;;  %v3650_v7 = vld [vmem:[%s4455_s28 + $0x78] sm:$0xf0] }
 0x366   : > { %3550 = vmatmul.msk.f32.vlgmr.msra.gmra.mxu0 %vm1837_vm6, %v1878_v30  ;;  %v3697_v30 = vor.u32 %v3989_v28, %v3696_v27  ;;  %v3969_v27 = vld [vmem:[%s4455_s28 + $0x34] sm:$0xf0] }
 0x367   : > { %2348 = vmatpush.bf16.msra.mxu0 %v3705_v10  ;;  %v3972_v10 = vld [vmem:[%s4455_s28 + $0x4c] sm:$0xf0] }
 0x368   : > { %v3625_v12 = vor.u32 %v3972_v10, %v3624_v9 }
 0x369   : > { %v1870_v31 = vpop.xlane.xlu0 %1869 }
 0x36a   : > { %4133 = vrcp.f32 %v1870_v31  ;;  %v3987_v31 = vld [vmem:[%s4455_s28 + $0xcc] sm:$0xf] }
 0x370   : > { %v4134_v32 = vpop.eup %4133 }
 0x371   : > { %v1880_v33 = vmul.f32 %v4134_v32, %v4126_v20  ;;  %v1873_v35 = vpop.xlane.xlu1 %1872  ;;  %v1867_v36 = vpop.xlane.xlu0 %1866  ;;  %v3698_v32 = vld [vmem:[%s4455_s28 + $0xd8] sm:$0xf0] }
 0x372   : > { %4135 = vrcp.f32 %v1873_v35  ;;  %v3672_v35 = vld [vmem:[%s4455_s28 + $0xa0] sm:$0xf] }
 0x373   : > { %4137 = vrcp.f32 %v1867_v36  ;;  %3552 = vmatmul.msk.f32.vlgmr.msra.gmra.mxu2 %vm1837_vm6, %v1880_v33  ;;  %v3701_v33 = vor.u32 %v3987_v31, %v3698_v32  ;;  %v3984_v36 = vld [vmem:[%s4455_s28 + $0xac] sm:$0xf0]  ;;  %v3618_v31 = vld [vmem:[%s4455_s28 + $0x38] sm:$0xf0]  ;;  %v3592_v32 = vld [vmem:[%s4455_s28] sm:$0xf] }
 0x374   : > { %2374 = vmatpush.bf16.msra.mxu2 %v3713_v15  ;;  %v3973_v15 = vld [vmem:[%s4455_s28 + $0x54] sm:$0xf0] }
 0x378   : > { %v4136_v37 = vpop.eup %4135  ;;  %2375 = vmatpush.bf16.msra.mxu2 %v3697_v30  ;;  %v3967_v30 = vld [vmem:[%s4455_s28 + $0x2c] sm:$0xf] }
 0x379   : > { %v4138_v38 = vpop.eup %4137  ;;  %v1881_v39 = vmul.f32 %v4136_v37, %v4130_v24  ;;  %v3986_v24 = vld [vmem:[%s4455_s28 + $0xc4] sm:$0xf] }
 0x37a   : > { %v1879_v40 = vmul.f32 %v4138_v38, %v4128_v23  ;;  %v3988_v23 = vld [vmem:[%s4455_s28 + $0xcc] sm:$0xf0]  ;;  %v3693_v29 = vor.u32 %v3986_v24, %v3690_v26  ;;  %v3982_v37 = vld [vmem:[%s4455_s28 + $0xa4] sm:$0xf]  ;;  %v3673_v38 = vor.u32 %v3984_v36, %v3672_v35  ;;  %v3616_v26 = vld [vmem:[%s4455_s28 + $0x28] sm:$0xf] }
 0x37b   : > { %3553 = vmatmul.msk.f32.vlgmr.msra.gmra.mxu3 %vm1837_vm6, %v1881_v39  ;;  %v3689_v25 = vor.u32 %v3988_v23, %v3688_v22  ;;  %v3674_v39 = vld [vmem:[%s4455_s28 + $0xb0] sm:$0xf0]  ;;  %v3968_v22 = vld [vmem:[%s4455_s28 + $0x2c] sm:$0xf0]  ;;  %v3966_v23 = vld [vmem:[%s4455_s28 + $0x24] sm:$0xf] }
 0x37c   : > { %3551 = vmatmul.msk.f32.vlgmr.msra.gmra.mxu1 %vm1837_vm6, %v1879_v40  ;;  %v3680_v40 = vld [vmem:[%s4455_s28 + $0xa8] sm:$0xf]  ;;  %v3677_v42 = vor.u32 %v3982_v37, %v3674_v39  ;;  %v3964_v35 = vld [vmem:[%s4455_s28 + $0xc] sm:$0xf0]  ;;  %v3962_v36 = vld [vmem:[%s4455_s28 + $0x4] sm:$0xf] }
 0x37d   : > { %2361 = vmatpush.bf16.msra.mxu1 %v3709_v14  ;;  %2349 = vmatpush.bf16.msra.mxu0 %v3689_v25  ;;  %v3681_v43 = vor.u32 %v3985_v41, %v3680_v40  ;;  %v3632_v14 = vld [vmem:[%s4455_s28 + $0x48] sm:$0xf]  ;;  %v3610_v25 = vld [vmem:[%s4455_s28 + $0x30] sm:$0xf0]  ;;  %v3965_v41 = vld [vmem:[%s4455_s28 + $0x14] sm:$0xf0] }
 0x37e   : > { %v3613_v28 = vor.u32 %v3966_v23, %v3610_v25  ;;  %v3594_v37 = vld [vmem:[%s4455_s28 + $0x10] sm:$0xf0]  ;;  %v3600_v40 = vld [vmem:[%s4455_s28 + $0x8] sm:$0xf] }
 0x37f   : > { %2376 = vmatpush.bf16.msra.mxu2 %v3681_v43  ;;  %v3597_v39 = vor.u32 %v3962_v36, %v3594_v37  ;;  %v3601_v43 = vor.u32 %v3965_v41, %v3600_v40  ;;  %v4025_v40 = vld [vmem:[%s4465_s0 + $0xf8] sm:$0xff] }
 0x381   : > { %2362 = vmatpush.bf16.msra.mxu1 %v3693_v29  ;;  %2350 = vmatpush.bf16.msra.mxu0 %v3673_v38  ;;  %v3617_v29 = vor.u32 %v3969_v27, %v3616_v26  ;;  %v3593_v38 = vor.u32 %v3964_v35, %v3592_v32  ;;  %v4008_v35 = vld [vmem:[%s4465_s0 + $0x70] sm:$0xff] }
 0x385   : > { %2363 = vmatpush.bf16.msra.mxu1 %v3677_v42  ;;  %v3963_v42 = vld [vmem:[%s4455_s28 + $0xc] sm:$0xf] }
 0x386   : > { %v3605_v45 = vor.u32 %v3963_v42, %v3602_v44  ;;  %v3999_v44 = vld [vmem:[%s4465_s0 + $0x28] sm:$0xff] }
 0x3e3   : > { %v1902_v48 = vpop.f32.mrf.mxu0 }
 0x3e4   : > { %v1974_v49 = vpack.c.bf16 %v1902_v48, %v1902_v48  ;;  %v3980_v48 = vld [vmem:[%s4455_s28 + $0x8c] sm:$0xf0] }
 0x3e6   : > { %3562 = vmatmul.msk.bf16.vlgmr.msrb.gmra.mxu0 %vm1718_vm4, %v1974_v49  ;;  %v3978_v49 = vld [vmem:[%s4455_s28 + $0x84] sm:$0xf] }
 0x3f6   : > { %v1948_v50 = vpop.f32.mrf.mxu2 }
 0x3f7   : > { %v1976_v51 = vpack.c.bf16 %v1948_v50, %v1948_v50  ;;  %v3657_v50 = vor.u32 %v3980_v48, %v3656_v47 }
 0x3f9   : > { %v1925_v52 = vpop.f32.mrf.mxu1  ;;  %3580 = vmatmul.msk.bf16.vlgmr.msrb.gmra.mxu2 %vm1718_vm4, %v1976_v51  ;;  %v3658_v51 = vld [vmem:[%s4455_s28 + $0x90] sm:$0xf0]  ;;  %2351 = vmatpush.bf16.msra.mxu0 %v3657_v50 }
 0x3fa   : > { %v1975_v53 = vpack.c.bf16 %v1925_v52, %v1925_v52  ;;  %v3664_v52 = vld [vmem:[%s4455_s28 + $0x88] sm:$0xf] }
 0x3fc   : > { %3571 = vmatmul.msk.bf16.vlgmr.msrb.gmra.mxu1 %vm1718_vm4, %v1975_v53  ;;  %v3981_v53 = vld [vmem:[%s4455_s28 + $0x94] sm:$0xf0] }
 0x3fe   : > { %v1971_v54 = vpop.f32.mrf.mxu3 }
 0x3ff   : > { %v1977_v55 = vpack.c.bf16 %v1971_v54, %v1971_v54  ;;  %v3661_v54 = vor.u32 %v3978_v49, %v3658_v51 }
 0x401   : > { %3589 = vmatmul.msk.bf16.vlgmr.msrb.gmra.mxu3 %vm1718_vm4, %v1977_v55  ;;  %v3665_v55 = vor.u32 %v3981_v53, %v3664_v52  ;;  %2364 = vmatpush.bf16.msra.mxu1 %v3661_v54 }
 0x403   : > { %2377 = vmatpush.bf16.msra.mxu2 %v3665_v55 }
 0x463   : > { %v2018_v56 = vpop.f32.mrf.mxu0 }
 0x46b   : > { %v2020_v57 = vpop.f32.mrf.mxu0 }
 0x46c   : > { %v3666_v57 = vld [vmem:[%s4455_s28 + $0x98] sm:$0xf0] }
 0x479   : > { %v2046_v58 = vpop.f32.mrf.mxu1 }
 0x47a   : > { %v2106_v60 = vadd.f32 %v2046_v58, %v2018_v56  ;;  %v3979_v56 = vld [vmem:[%s4455_s28 + $0x8c] sm:$0xf] }
 0x47b   : > { %v3669_v58 = vor.u32 %v3979_v56, %v3666_v57 }
 0x47c   : > { %v2074_v59 = vpop.f32.mrf.mxu2 }
 0x47d   : > { %v2107_v62 = vadd.f32 %v2106_v60, %v2074_v59  ;;  %v3640_v59 = vld [vmem:[%s4455_s28 + $0x60] sm:$0xf]  ;;  %v3976_v60 = vld [vmem:[%s4455_s28 + $0x6c] sm:$0xf0] }
 0x481   : > { %v2048_v61 = vpop.f32.mrf.mxu1 }
 0x482   : > { %v3974_v61 = vld [vmem:[%s4455_s28 + $0x64] sm:$0xf] }
 0x484   : > { %v2076_v0 = vpop.f32.mrf.mxu2  ;;  %v2102_v2 = vpop.f32.mrf.mxu3 }
 0x485   : > { %v2108_v3 = vadd.f32 %v2107_v62, %v2102_v2  ;;  %v3641_v62 = vor.u32 %v3976_v60, %v3640_v59  ;;  %v3648_v0 = vld [vmem:[%s4455_s28 + $0x68] sm:$0xf]  ;;  %v3977_v2 = vld [vmem:[%s4455_s28 + $0x74] sm:$0xf0] }
 0x487   : > { %v2113_v4 = vadd.f32 %v4115_v63, %v2108_v3  ;;  %v3642_v63 = vld [vmem:[%s4455_s28 + $0x70] sm:$0xf0]  ;;  %2352 = vmatpush.bf16.msra.mxu0 %v3641_v62  ;;  %v2178_v62 = vld [vmem:[%s4460_s15] sm:$0xf] }
 0x488   : > { %v3645_v3 = vor.u32 %v3974_v61, %v3642_v63  ;;  %v2180_v63 = vperm.slane %v2178_v62, 0  ;;  %v2183_v9 = vperm.slane %v2178_v62, 3 }
 0x489   : > { %v4659_v5 = vadd.f32 %v2113_v4, %v4476_v1  ;;  %v3717_v1 = vor.u32 %v3991_v16, %v3714_v17  ;;  %v3649_v4 = vor.u32 %v3977_v2, %v3648_v0  ;;  %v3629_v16 = vor.u32 %v3970_v11, %v3626_v13  ;;  %v4009_v13 = vld [vmem:[%s4465_s0 + $0x78] sm:$0xff] }
 0x48a   : > { %2365 = vmatpush.bf16.msra.mxu1 %v3645_v3  ;;  %v3633_v17 = vor.u32 %v3973_v15, %v3632_v14  ;;  %v2181_v0 = vperm.slane %v2178_v62, 1 }
 0x48b   : > { %2117 = vadd.xlane.f32.xlu1 %v4659_v5  ;;  %2387 = vmatpush.bf16.msra.mxu3 %v3717_v1  ;;  %v3971_v1 = vld [vmem:[%s4455_s28 + $0x4c] sm:$0xf] }
 0x48c   : > { %v2104_v6 = vpop.f32.mrf.mxu3  ;;  %2378 = vmatpush.bf16.msra.mxu2 %v3649_v4  ;;  %2353 = vmatpush.bf16.msra.mxu0 %v3625_v12  ;;  %v4001_v12 = vld [vmem:[%s4465_s0 + $0x38] sm:$0xff] }
 0x48d   : > { %v3975_v6 = vld [vmem:[%s4455_s28 + $0x6c] sm:$0xf] }
 0x48e   : > { %v3653_v8 = vor.u32 %v3975_v6, %v3650_v7  ;;  %2366 = vmatpush.bf16.msra.mxu1 %v3629_v16 }
 0x48f   : > { %2388 = vmatpush.bf16.msra.mxu3 %v3701_v33  ;;  %v3621_v33 = vor.u32 %v3967_v30, %v3618_v31 }
 0x490   : > { %2379 = vmatpush.bf16.msra.mxu2 %v3633_v17 }
 0x492   : > { %2367 = vmatpush.bf16.msra.mxu1 %v3613_v28 }
 0x493   : > { %2389 = vmatpush.bf16.msra.mxu3 %v3685_v46 }
 0x494   : > { %2380 = vmatpush.bf16.msra.mxu2 %v3617_v29 }
 0x496   : > { %2368 = vmatpush.bf16.msra.mxu1 %v3597_v39  ;;  %v4017_v39 = vld [vmem:[%s4465_s0 + $0xb8] sm:$0xff] }
 0x497   : > { %2390 = vmatpush.bf16.msra.mxu3 %v3669_v58  ;;  %v4117_v58 = vld [vmem:[%s5010_s25] ss:$0 sm:$0xff] }
 0x498   : > { %2381 = vmatpush.bf16.msra.mxu2 %v3601_v43 }
 0x49a   : > { %2853 = vmatpush.bf16.msrb.mxu1 %v4009_v13 }
 0x49b   : > { %2391 = vmatpush.bf16.msra.mxu3 %v3653_v8  ;;  %v2182_v8 = vperm.slane %v2178_v62, 2 }
 0x49c   : > { %2866 = vmatpush.bf16.msrb.mxu2 %v4017_v39 }
 0x49e   : > { %2854 = vmatpush.bf16.msrb.mxu1 %v4008_v35 }
 0x4fe   : > { %v2118_v18 = vpop.xlane.xlu1 %2117 }
 0x4ff   : > { %v2119_v19 = vmul.f32 %v2118_v18, %v4505_v34  ;;  %v3634_v18 = vld [vmem:[%s4455_s28 + $0x58] sm:$0xf0] }
 0x501   : > { %v4672_v20 = vsub.f32 %v4659_v5, %v2119_v19  ;;  %v3637_v19 = vor.u32 %v3971_v1, %v3634_v18 }
 0x503   : > { %v2121_v21 = vmul.f32 %v4672_v20, %v4672_v20  ;;  %2392 = vmatpush.bf16.msra.mxu3 %v3637_v19 }
 0x505   : > { %2122 = vadd.xlane.f32.xlu2 %v2121_v21  ;;  %v3608_v21 = vld [vmem:[%s4455_s28 + $0x20] sm:$0xf]  ;;  %s5009_s28 = scalar_lea.vmem %s4953_s7, %s4407_s16 }
 0x506   : > { %v3609_v24 = vor.u32 %v3968_v22, %v3608_v21  ;;  %v4116_v55 = vld [vmem:[%s5009_s28] ss:$0 sm:$0xff] }
 0x507   : > { %2393 = vmatpush.bf16.msra.mxu3 %v3621_v33  ;;  %v4000_v33 = vld [vmem:[%s4465_s0 + $0x30] sm:$0xff] }
 0x508   : > { %2354 = vmatpush.bf16.msra.mxu0 %v3609_v24 }
 0x50b   : > { %2394 = vmatpush.bf16.msra.mxu3 %v3605_v45  ;;  %v4007_v45 = vld [vmem:[%s4465_s0 + $0x68] sm:$0xff] }
 0x50c   : > { %2355 = vmatpush.bf16.msra.mxu0 %v3593_v38  ;;  %2855 = vmatpush.bf16.msrb.mxu1 %v4007_v45 }
 0x50f   : > { %2879 = vmatpush.bf16.msrb.mxu3 %v4025_v40 }
 0x510   : > { %2840 = vmatpush.bf16.msrb.mxu0 %v4001_v12  ;;  %v4023_v12 = vld [vmem:[%s4465_s0 + $0xe8] sm:$0xff] }
 0x514   : > { %2841 = vmatpush.bf16.msrb.mxu0 %v4000_v33  ;;  %v4022_v33 = vld [vmem:[%s4465_s0 + $0xe0] sm:$0xff] }
 0x518   : > { %2842 = vmatpush.bf16.msrb.mxu0 %v3999_v44  ;;  %v4004_v44 = vld [vmem:[%s4465_s0 + $0x50] sm:$0xff] }
 0x578   : > { %v2123_v46 = vpop.xlane.xlu2 %2122 }
 0x579   : > { %v2124_v47 = vmul.f32 %v2123_v46, %v4505_v34 }
 0x57b   : > { %v2125_v48 = vadd.f32 1e-05, %v2124_v47 }
 0x57d   : > { %4139 = vrsqrt.f32 %v2125_v48  ;;  %vm2132_vm8 = vweird.f32 %v2125_v48 }
 0x583   : > { %v4140_v49 = vpop.eup %4139 }
 0x584   : > { %v2127_v50 = vmul.f32 %v4140_v49, %v2125_v48  ;;  %vm2133_vm7 = vweird.f32 %v4140_v49 }
 0x585   : > { %vm2134_vm9 = vmor %vm2132_vm8, %vm2133_vm7 }
 0x586   : > { %v2128_v51 = vmul.f32 %v4140_v49, %v2127_v50 }
 0x588   : > { %v2129_v52 = vmul.f32 0.5, %v2128_v51 }
 0x58a   : > { %v2130_v53 = vsub.f32 1.5, %v2129_v52 }
 0x58c   : > { %v2131_v54 = vmul.f32 %v4140_v49, %v2130_v53 }
 0x58e   : > { %v2135_v56 = vsel %vm2134_vm9, %v4140_v49, %v2131_v54 }
 0x58f   : > { %v2136_v57 = vmul.f32 %v2135_v56, %v4672_v20 }
 0x591   : > { %v2140_v59 = vmul.f32 %v4116_v55, %v2136_v57 }
 0x593   : > { %v2144_v60 = vadd.f32 %v4117_v58, %v2140_v59  ;;  %v4016_v58 = vld [vmem:[%s4465_s0 + $0xb0] sm:$0xff] }
 0x594   : > { %v4024_v59 = vld [vmem:[%s4465_s0 + $0xf0] sm:$0xff]  ;;  %2867 = vmatpush.bf16.msrb.mxu2 %v4016_v58 }
 0x595   : > { %v2145_v61 = vpack.c.bf16 %v2144_v60, %v2144_v60  ;;  %2880 = vmatpush.bf16.msrb.mxu3 %v4024_v59 }
 0x597   : > { %2356 = vmatmul.bf16.vlgmr.msra.gmra.mxu0 %v2145_v61  ;;  %2369 = vmatmul.bf16.vlgmr.msra.gmra.mxu1 %v2145_v61 }
 0x598   : > { %2382 = vmatmul.bf16.vlgmr.msra.gmra.mxu2 %v2145_v61  ;;  %2395 = vmatmul.bf16.vlgmr.msra.gmra.mxu3 %v2145_v61 }
 0x599   : > { %2881 = vmatpush.bf16.msrb.mxu3 %v4023_v12  ;;  %v4019_v12 = vld [vmem:[%s4465_s0 + $0xc8] sm:$0xff] }
 0x59d   : > { %2882 = vmatpush.bf16.msrb.mxu3 %v4022_v33  ;;  %v4018_v33 = vld [vmem:[%s4465_s0 + $0xc0] sm:$0xff] }
 0x614   : > { %v2357_v2 = vpop.f32.mrf.mxu0  ;;  %v2370_v3 = vpop.f32.mrf.mxu1 }
 0x615   : > { %v4745_v20 = vadd.f32 %v2357_v2, %v2180_v63  ;;  %v4747_v4 = vadd.f32 %v2370_v3, %v2181_v0  ;;  %v3998_v63 = vld [vmem:[%s4465_s0 + $0x20] sm:$0xff] }
 0x616   : > { %v4006_v0 = vld [vmem:[%s4465_s0 + $0x60] sm:$0xff]  ;;  %2843 = vmatpush.bf16.msrb.mxu0 %v3998_v63 }
 0x617   : > { %v4750_v6 = vmul.f32 0.70710677, %v4745_v20  ;;  %v4753_v7 = vmul.f32 0.70710677, %v4747_v4  ;;  %2856 = vmatpush.bf16.msrb.mxu1 %v4006_v0 }
 0x619   : > { %v2408_v10 = vmul.f32 %v4750_v6, %v4750_v6  ;;  %v2448_v11 = vmul.f32 %v4753_v7, %v4753_v7 }
 0x61b   : > { %v4761_v14 = vmin.f32 %v2408_v10, 16.0  ;;  %v4763_v15 = vmin.f32 %v2448_v11, 16.0  ;;  %v2383_v16 = vpop.f32.mrf.mxu2  ;;  %v2396_v17 = vpop.f32.mrf.mxu3  ;;  %v4015_v11 = vld [vmem:[%s4465_s0 + $0xa8] sm:$0xff] }
 0x61c   : > { %v4765_v1 = vadd.f32 %v2383_v16, %v2182_v8  ;;  %v4767_v18 = vadd.f32 %v2396_v17, %v2183_v9  ;;  %v2359_v19 = vpop.f32.mrf.mxu0  ;;  %v2372_v21 = vpop.f32.mrf.mxu1  ;;  %2868 = vmatpush.bf16.msrb.mxu2 %v4015_v11  ;;  %v4011_v11 = vld [vmem:[%s4465_s0 + $0x88] sm:$0xff] }
 0x61d   : > { %v2410_v22 = vmul.f32 2.1237322e-06, %v4761_v14  ;;  %v2421_v23 = vmul.f32 3.8918573e-05, %v4761_v14  ;;  %v2450_v24 = vmul.f32 2.1237322e-06, %v4763_v15 }
 0x61e   : > { %v2461_v25 = vmul.f32 3.8918573e-05, %v4763_v15  ;;  %v4774_v26 = vmul.f32 0.70710677, %v4765_v1  ;;  %v4779_v32 = vmul.f32 0.70710677, %v4767_v18 }
 0x61f   : > { %v2411_v27 = vadd.f32 0.00028619796, %v2410_v22  ;;  %v2422_v28 = vadd.f32 0.001143296, %v2421_v23  ;;  %v2451_v29 = vadd.f32 0.00028619796, %v2450_v24 }
 0x620   : > { %v2462_v30 = vadd.f32 0.001143296, %v2461_v25  ;;  %v2488_v31 = vmul.f32 %v4774_v26, %v4774_v26  ;;  %v2528_v43 = vmul.f32 %v4779_v32, %v4779_v32  ;;  %v3997_v24 = vld [vmem:[%s4465_s0 + $0x18] sm:$0xff] }
 0x621   : > { %v2412_v36 = vmul.f32 %v2411_v27, %v4761_v14  ;;  %v2423_v37 = vmul.f32 %v2422_v28, %v4761_v14  ;;  %v2452_v38 = vmul.f32 %v2451_v29, %v4763_v15  ;;  %v4005_v25 = vld [vmem:[%s4465_s0 + $0x58] sm:$0xff]  ;;  %2844 = vmatpush.bf16.msrb.mxu0 %v3997_v24 }
 0x622   : > { %v2463_v41 = vmul.f32 %v2462_v30, %v4763_v15  ;;  %v4789_v42 = vmin.f32 %v2488_v31, 16.0  ;;  %v4800_v57 = vmin.f32 %v2528_v43, 16.0  ;;  %v4014_v31 = vld [vmem:[%s4465_s0 + $0xa0] sm:$0xff]  ;;  %2857 = vmatpush.bf16.msrb.mxu1 %v4005_v25  ;;  %v3996_v43 = vld [vmem:[%s4465_s0 + $0x10] sm:$0xff] }
 0x623   : > { %v2413_v46 = vadd.f32 0.0036580483, %v2412_v36  ;;  %v2424_v47 = vadd.f32 0.014752088, %v2423_v37  ;;  %v2453_v48 = vadd.f32 0.0036580483, %v2452_v38  ;;  %v2385_v49 = vpop.f32.mrf.mxu2  ;;  %v2398_v50 = vpop.f32.mrf.mxu3  ;;  %2869 = vmatpush.bf16.msrb.mxu2 %v4014_v31 }
 0x624   : > { %v2464_v51 = vadd.f32 0.014752088, %v2463_v41  ;;  %v2490_v52 = vmul.f32 2.1237322e-06, %v4789_v42  ;;  %v2501_v53 = vmul.f32 3.8918573e-05, %v4789_v42 }
 0x625   : > { %v2414_v54 = vmul.f32 %v2413_v46, %v4761_v14  ;;  %v2425_v55 = vmul.f32 %v2424_v47, %v4761_v14  ;;  %v2454_v56 = vmul.f32 %v2453_v48, %v4763_v15  ;;  %v2530_v17 = vmul.f32 2.1237322e-06, %v4800_v57  ;;  %v4013_v46 = vld [vmem:[%s4465_s0 + $0x98] sm:$0xff]  ;;  %2845 = vmatpush.bf16.msrb.mxu0 %v3996_v43  ;;  %v4010_v31 = vld [vmem:[%s4465_s0 + $0x80] sm:$0xff] }
 0x626   : > { %v2465_v60 = vmul.f32 %v2464_v51, %v4763_v15  ;;  %v2491_v61 = vadd.f32 0.00028619796, %v2490_v52  ;;  %v2502_v62 = vadd.f32 0.001143296, %v2501_v53  ;;  %v2541_v19 = vmul.f32 3.8918573e-05, %v4800_v57  ;;  %2858 = vmatpush.bf16.msrb.mxu1 %v4004_v44 }
 0x627   : > { %v2415_v2 = vadd.f32 0.05243302, %v2414_v54  ;;  %v2426_v3 = vadd.f32 0.112945676, %v2425_v55  ;;  %v2455_v16 = vadd.f32 0.05243302, %v2454_v56  ;;  %2870 = vmatpush.bf16.msrb.mxu2 %v4013_v46 }
 0x628   : > { %v2466_v8 = vadd.f32 0.112945676, %v2465_v60  ;;  %v2492_v9 = vmul.f32 %v2491_v61, %v4789_v42  ;;  %v2503_v10 = vmul.f32 %v2502_v62, %v4789_v42  ;;  %v2531_v37 = vadd.f32 0.00028619796, %v2530_v17  ;;  %v4021_v50 = vld [vmem:[%s4465_s0 + $0xd8] sm:$0xff]  ;;  %v3995_v55 = vld [vmem:[%s4465_s0 + $0x8] sm:$0xff] }
 0x629   : > { %v2427_v13 = vmul.f32 %v2426_v3, %v4761_v14  ;;  %v2416_v21 = vmul.f32 %v2415_v2, %v4761_v14  ;;  %v2456_v36 = vmul.f32 %v2455_v16, %v4763_v15  ;;  %v2542_v38 = vadd.f32 0.001143296, %v2541_v19  ;;  %v4003_v56 = vld [vmem:[%s4465_s0 + $0x48] sm:$0xff]  ;;  %2883 = vmatpush.bf16.msrb.mxu3 %v4021_v50  ;;  %v4012_v60 = vld [vmem:[%s4465_s0 + $0x90] sm:$0xff]  ;;  %2846 = vmatpush.bf16.msrb.mxu0 %v3995_v55  ;;  %v3994_v3 = vld [vmem:[%s4465_s0] sm:$0xff] }
 0x62a   : > { %v2467_v22 = vmul.f32 %v2466_v8, %v4763_v15  ;;  %v2504_v23 = vadd.f32 0.014752088, %v2503_v10  ;;  %v2493_v29 = vadd.f32 0.0036580483, %v2492_v9  ;;  %v2532_v54 = vmul.f32 %v2531_v37, %v4800_v57  ;;  %v4020_v62 = vld [vmem:[%s4465_s0 + $0xd0] sm:$0xff]  ;;  %2859 = vmatpush.bf16.msrb.mxu1 %v4003_v56  ;;  %v4002_v8 = vld [vmem:[%s4465_s0 + $0x40] sm:$0xff] }
 0x62b   : > { %v2428_v27 = vadd.f32 0.4994258, %v2427_v13  ;;  %v2417_v39 = vadd.f32 0.18741608, %v2416_v21  ;;  %v2457_v51 = vadd.f32 0.18741608, %v2456_v36  ;;  %v2543_v52 = vmul.f32 %v2542_v38, %v4800_v57  ;;  %2871 = vmatpush.bf16.msrb.mxu2 %v4012_v60 }
 0x62c   : > { %v2468_v28 = vadd.f32 0.4994258, %v2467_v22  ;;  %v2505_v30 = vmul.f32 %v2504_v23, %v4789_v42  ;;  %v2494_v48 = vmul.f32 %v2493_v29, %v4789_v42  ;;  %v2533_v2 = vadd.f32 0.0036580483, %v2532_v54 }
 0x62d   : > { %v2429_v35 = vmul.f32 %v2428_v27, %v4761_v14  ;;  %v2418_v53 = vmul.f32 %v2417_v39, %v4761_v14  ;;  %v2458_v61 = vmul.f32 %v2457_v51, %v4763_v15  ;;  %v2544_v14 = vadd.f32 0.014752088, %v2543_v52  ;;  %2884 = vmatpush.bf16.msrb.mxu3 %v4020_v62  ;;  %2847 = vmatpush.bf16.msrb.mxu0 %v3994_v3 }
 0x62e   : > { %v2469_v40 = vmul.f32 %v2468_v28, %v4763_v15  ;;  %v2506_v41 = vadd.f32 0.112945676, %v2505_v30  ;;  %v2495_v58 = vadd.f32 0.05243302, %v2494_v48  ;;  %v2534_v25 = vmul.f32 %v2533_v2, %v4800_v57  ;;  %2860 = vmatpush.bf16.msrb.mxu1 %v4002_v8 }
 0x62f   : > { %v4826_v45 = vadd.f32 1.0, %v2429_v35  ;;  %v2419_v63 = vadd.f32 1.1283791, %v2418_v53  ;;  %v2545_v10 = vmul.f32 %v2544_v14, %v4800_v57  ;;  %v2459_v19 = vadd.f32 1.1283791, %v2458_v61  ;;  %2872 = vmatpush.bf16.msrb.mxu2 %v4011_v11 }
 0x630   : > { %v4829_v47 = vadd.f32 1.0, %v2469_v40  ;;  %v2507_v49 = vmul.f32 %v2506_v41, %v4789_v42  ;;  %v2496_v16 = vmul.f32 %v2495_v58, %v4789_v42  ;;  %v2535_v43 = vadd.f32 0.05243302, %v2534_v25 }
 0x631   : > { %4141 = vrcp.f32 %v4826_v45  ;;  %v2546_v22 = vadd.f32 0.112945676, %v2545_v10  ;;  %v2420_v23 = vmul.f32 %v2419_v63, %v4750_v6  ;;  %v2440_v27 = vand.u32 2147483647, %v4826_v45  ;;  %2885 = vmatpush.bf16.msrb.mxu3 %v4019_v12 }
 0x632   : > { %4143 = vrcp.f32 %v4829_v47  ;;  %v2508_v59 = vadd.f32 0.4994258, %v2507_v49  ;;  %v2442_v28 = vand.u32 2147483648, %v4826_v45  ;;  %v2482_v6 = vand.u32 2147483648, %v4829_v47 }
 0x633   : > { %v2547_v30 = vmul.f32 %v2546_v22, %v4800_v57  ;;  %v2497_v36 = vadd.f32 0.18741608, %v2496_v16  ;;  %v2480_v38 = vand.u32 2147483647, %v4829_v47  ;;  %vm2436_vm12 = vweird.f32 %v4826_v45  ;;  %2873 = vmatpush.bf16.msrb.mxu2 %v4010_v31 }
 0x634   : > { %v2509_v0 = vmul.f32 %v2508_v59, %v4789_v42  ;;  %v2460_v41 = vmul.f32 %v2459_v19, %v4753_v7  ;;  %v2443_v44 = vor.u32 1.1754944e-38, %v2442_v28  ;;  %vm2476_vm14 = vweird.f32 %v4829_v47 }
 0x635   : > { %v2548_v39 = vadd.f32 0.4994258, %v2547_v30  ;;  %2886 = vmatpush.bf16.msrb.mxu3 %v4018_v33  ;;  %vm2441_vm15 = vcmp.eq.f32.partialorder %v2440_v27, 8.507059e+37  ;;  %v2483_v51 = vor.u32 1.1754944e-38, %v2482_v6  ;;  %vm2481_vm1 = vcmp.eq.f32.partialorder %v2480_v38, 8.507059e+37 }
 0x636   : > { %v4852_v17 = vadd.f32 1.0, %v2509_v0  ;;  %v2400_v0 = vmul.f32 0.5, %v4745_v20  ;;  %v2401_v8 = vmul.f32 0.5, %v4747_v4 }
 0x637   : > { %v4142_v9 = vpop.eup %4141  ;;  %v2549_v48 = vmul.f32 %v2548_v39, %v4800_v57 }
 0x638   : > { %v4144_v13 = vpop.eup %4143  ;;  %v2432_v15 = vmul.f32 %v4142_v9, %v4826_v45  ;;  %4145 = vrcp.f32 %v4852_v17  ;;  %vm2437_vm10 = vweird.f32 %v4142_v9  ;;  %v2498_v45 = vmul.f32 %v2497_v36, %v4789_v42 }
 0x639   : > { %v2472_v21 = vmul.f32 %v4144_v13, %v4829_v47  ;;  %vm2477_vm11 = vweird.f32 %v4144_v13  ;;  %vm2438_vm13 = vmor %vm2436_vm12, %vm2437_vm10  ;;  %v2536_v47 = vmul.f32 %v2535_v43, %v4800_v57  ;;  %v2550_v56 = vadd.f32 1.0, %v2549_v48 }
 0x63a   : > { %v2433_v24 = vsub.f32 1.0, %v2432_v15  ;;  %vm2478_vm0 = vmor %vm2476_vm14, %vm2477_vm11  ;;  %v2499_v61 = vadd.f32 1.1283791, %v2498_v45  ;;  %v2522_v14 = vand.u32 2147483648, %v4852_v17  ;;  %v2520_v42 = vand.u32 2147483647, %v4852_v17 }
 0x63b   : > { %v2473_v29 = vsub.f32 1.0, %v2472_v21  ;;  %4147 = vrcp.f32 %v2550_v56  ;;  %v2537_v3 = vadd.f32 0.18741608, %v2536_v47  ;;  %vm2516_vm3 = vweird.f32 %v4852_v17 }
 0x63c   : > { %v2434_v35 = vmul.f32 %v4142_v9, %v2433_v24  ;;  %v2523_v12 = vor.u32 1.1754944e-38, %v2522_v14  ;;  %v2500_v15 = vmul.f32 %v2499_v61, %v4774_v26  ;;  %vm2521_vm5 = vcmp.eq.f32.partialorder %v2520_v42, 8.507059e+37 }
 0x63d   : > { %v2474_v37 = vmul.f32 %v4144_v13, %v2473_v29  ;;  %v2538_v20 = vmul.f32 %v2537_v3, %v4800_v57  ;;  %v2562_v29 = vand.u32 2147483648, %v2550_v56  ;;  %v2560_v31 = vand.u32 2147483647, %v2550_v56 }
 0x63e   : > { %v2435_v40 = vadd.f32 %v4142_v9, %v2434_v35  ;;  %v4146_v49 = vpop.eup %4145  ;;  %vm2556_vm7 = vweird.f32 %v2550_v56 }
 0x63f   : > { %v2475_v46 = vadd.f32 %v4144_v13, %v2474_v37  ;;  %v2512_v53 = vmul.f32 %v4146_v49, %v4852_v17  ;;  %vm2517_vm2 = vweird.f32 %v4146_v49  ;;  %v2402_v17 = vmul.f32 0.5, %v4765_v1 }
 0x640   : > { %v2439_v50 = vsel %vm2438_vm13, %v4142_v9, %v2435_v40  ;;  %vm2518_vm4 = vmor %vm2516_vm3, %vm2517_vm2  ;;  %v2539_v28 = vadd.f32 1.1283791, %v2538_v20  ;;  %v2563_v57 = vor.u32 1.1754944e-38, %v2562_v29  ;;  %vm2561_vm9 = vcmp.eq.f32.partialorder %v2560_v31, 8.507059e+37 }
 0x641   : > { %v2444_v52 = vsel %vm2441_vm15, %v2443_v44, %v2439_v50  ;;  %v2479_v7 = vsel %vm2478_vm0, %v4144_v13, %v2475_v46  ;;  %v2513_v59 = vsub.f32 1.0, %v2512_v53  ;;  %v4148_v19 = vpop.eup %4147  ;;  %v2403_v40 = vmul.f32 0.5, %v4767_v18 }
 0x642   : > { %v2445_v54 = vmul.f32 %v2444_v52, %v2420_v23  ;;  %v2484_v55 = vsel %vm2481_vm1, %v2483_v51, %v2479_v7  ;;  %v2552_v4 = vmul.f32 %v4148_v19, %v2550_v56  ;;  %vm2557_vm6 = vweird.f32 %v4148_v19 }
 0x643   : > { %v2485_v58 = vmul.f32 %v2484_v55, %v2460_v41  ;;  %v2514_v63 = vmul.f32 %v4146_v49, %v2513_v59  ;;  %vm2558_vm8 = vmor %vm2556_vm7, %vm2557_vm6  ;;  %v2540_v36 = vmul.f32 %v2539_v28, %v4779_v32  ;;  %v4118_v32 = vld [vmem:[%s699_s3] ss:$0 sm:$0xff] }
 0x644   : > { %v3718_v60 = vclamps-f32 %v2445_v54, 1.0  ;;  %v2553_v27 = vsub.f32 1.0, %v2552_v4 }
 0x645   : > { %v3719_v62 = vclamps-f32 %v2485_v58, 1.0  ;;  %v2515_v10 = vadd.f32 %v4146_v49, %v2514_v63 }
 0x646   : > { %v2568_v2 = vadd.f32 1.0, %v3718_v60  ;;  %v2554_v26 = vmul.f32 %v4148_v19, %v2553_v27 }
 0x647   : > { %v2569_v9 = vadd.f32 1.0, %v3719_v62  ;;  %v2519_v16 = vsel %vm2518_vm4, %v4146_v49, %v2515_v10 }
 0x648   : > { %v2572_v11 = vmul.f32 %v2568_v2, %v2400_v0  ;;  %v2524_v22 = vsel %vm2521_vm5, %v2523_v12, %v2519_v16  ;;  %v2555_v35 = vadd.f32 %v4148_v19, %v2554_v26 }
 0x649   : > { %v2573_v13 = vmul.f32 %v2569_v9, %v2401_v8  ;;  %v2525_v24 = vmul.f32 %v2524_v22, %v2500_v15 }
 0x64a   : > { %v2576_v21 = vpack.c.bf16 %v2572_v11, %v2572_v11  ;;  %v2559_v37 = vsel %vm2558_vm8, %v4148_v19, %v2555_v35 }
 0x64b   : > { %v2577_v23 = vpack.c.bf16 %v2573_v13, %v2573_v13  ;;  %v3720_v25 = vclamps-f32 %v2525_v24, 1.0  ;;  %v2564_v38 = vsel %vm2561_vm9, %v2563_v57, %v2559_v37 }
 0x64c   : > { %2848 = vmatmul.bf16.vlgmr.msrb.gmra.mxu0 %v2576_v21  ;;  %v2565_v39 = vmul.f32 %v2564_v38, %v2540_v36 }
 0x64d   : > { %2861 = vmatmul.bf16.vlgmr.msrb.gmra.mxu1 %v2577_v23  ;;  %v2570_v30 = vadd.f32 1.0, %v3720_v25 }
 0x64e   : > { %v3721_v1 = vclamps-f32 %v2565_v39, 1.0 }
 0x64f   : > { %v2574_v33 = vmul.f32 %v2570_v30, %v2402_v17 }
 0x650   : > { %v2571_v41 = vadd.f32 1.0, %v3721_v1 }
 0x651   : > { %v2578_v6 = vpack.c.bf16 %v2574_v33, %v2574_v33 }
 0x652   : > { %v2575_v43 = vmul.f32 %v2571_v41, %v2403_v40 }
 0x653   : > { %2874 = vmatmul.bf16.vlgmr.msrb.gmra.mxu2 %v2578_v6 }
 0x654   : > { %v2579_v44 = vpack.c.bf16 %v2575_v43, %v2575_v43 }
 0x656   : > { %2887 = vmatmul.bf16.vlgmr.msrb.gmra.mxu3 %v2579_v44 }
 0x6c9   : > { %v2849_v46 = vpop.f32.mrf.mxu0 }
 0x6ca   : > { %v2862_v48 = vpop.f32.mrf.mxu1  ;;  %v2850_v45 = vadd.f32 %v4118_v32, %v2849_v46 }
 0x6cc   : > { %v2863_v52 = vadd.f32 %v2862_v48, %v2850_v45 }
 0x6d1   : > { %v2851_v49 = vpop.f32.mrf.mxu0 }
 0x6d2   : > { %v2864_v50 = vpop.f32.mrf.mxu1 }
 0x6d6   : > { %v2875_v51 = vpop.f32.mrf.mxu2 }
 0x6d7   : > { %v2876_v7 = vadd.f32 %v2875_v51, %v2863_v52 }
 0x6d9   : > { %v2888_v18 = vpop.f32.mrf.mxu3 }
 0x6da   : > { %v2889_v54 = vadd.f32 %v2888_v18, %v2876_v7 }
 0x6dc   : > { %v2892_v55 = vadd.f32 %v2889_v54, %v4659_v5 }
 0x6dd   : > { %2897 = sbr.rel (%p3850_p1) target bundleno = 2033 (0x7f1), region = 88 }
 0x6de   : > { %v2877_v53 = vpop.f32.mrf.mxu2  ;;  %2893 = vst [vmem:[%s4471_s13] sm:$0xff] %v2892_v55 }
 0x6e1   : > { %v2890_v47 = vpop.f32.mrf.mxu3 }
 0x6e2   : > { %v4149_v9 = vld [vmem:[%s5013_s21] ss:$0 sm:$0xff] }
 0x6e5   : > { %v2898_v56 = vld [vmem:[%s4471_s13] sm:$0xff] }
 0x6e6   : > { %2901 = vadd.xlane.f32.xlu0 %v2898_v56 }
 0x759   : > { %v2902_v58 = vpop.xlane.xlu0 %2901 }
 0x75a   : > { %v2903_v59 = vmul.f32 %v2902_v58, %v4505_v34 }
 0x75c   : > { %v2904_v60 = vsub.f32 %v2898_v56, %v2903_v59 }
 0x75e   : > { %v2905_v61 = vmul.f32 %v2904_v60, %v2904_v60 }
 0x760   : > { %2906 = vadd.xlane.f32.xlu0 %v2905_v61 }
 0x7d3   : > { %v2907_v14 = vpop.xlane.xlu0 %2906 }
 0x7d4   : > { %v2908_v62 = vmul.f32 %v2907_v14, %v4505_v34  ;;  %v4150_v34 = vld [vmem:[%s5014_s23] ss:$0 sm:$0xff] }
 0x7d6   : > { %v2909_v63 = vadd.f32 1e-05, %v2908_v62 }
 0x7d8   : > { %4151 = vrsqrt.f32 %v2909_v63  ;;  %vm2916_vm11 = vweird.f32 %v2909_v63 }
 0x7de   : > { %v4152_v5 = vpop.eup %4151 }
 0x7df   : > { %v2911_v42 = vmul.f32 %v4152_v5, %v2909_v63  ;;  %vm2917_vm10 = vweird.f32 %v4152_v5 }
 0x7e0   : > { %vm2918_vm12 = vmor %vm2916_vm11, %vm2917_vm10 }
 0x7e1   : > { %v2912_v0 = vmul.f32 %v4152_v5, %v2911_v42 }
 0x7e3   : > { %v2913_v2 = vmul.f32 0.5, %v2912_v0 }
 0x7e5   : > { %v2914_v3 = vsub.f32 1.5, %v2913_v2 }
 0x7e7   : > { %v2915_v8 = vmul.f32 %v4152_v5, %v2914_v3 }
 0x7e9   : > { %v2919_v10 = vsel %vm2918_vm12, %v4152_v5, %v2915_v8 }
 0x7ea   : > { %v2920_v11 = vmul.f32 %v2919_v10, %v2904_v60 }
 0x7ec   : > { %v2924_v12 = vmul.f32 %v4149_v9, %v2920_v11 }
 0x7ee   : > { %v2928_v13 = vadd.f32 %v4150_v34, %v2924_v12 }
 0x7f0   : > { %2929 = vst [vmem:[%s4471_s13] sm:$0xff] %v2928_v13 }
 0x7f1 PF: > { %s5015_s24 = sld [smem:[#allocation9_spill]]  ;;  %s2943_s28 = sshll.u32 %s4471_s13, 4  ;;  %s2944_s28 = int_to_ptr.vmem [resolvable:$true] %s2943_s28 }
 0x7f2   : > { %s5016_s30 = sld [smem:[#allocation6_spill]] }
 0x7f3   : > { %s5018_s14 = sld [smem:[#allocation25_spill]] }
 0x7f7   : > { %s3852_s18 = sshll.u32 %s5015_s24, 3 }
 0x7f8   : > { %s5019_s27 = sand.u32 1, %s5016_s30  }
 0x7f9   : > { %s2941_s29 = scalar_lea.hbm %s5018_s14, %s3852_s18  ;;  %s2931_s25 = scalar_lea.sflag [#allocation3], %s5019_s27 }
 0x7fa   : > { %s2945_s22 = sshll.u32 %s2941_s29, 4  ;;  %s4173_s3 = scalar_lea.hbm %s5018_s14, 16  ;;  %s2946_s22 = int_to_ptr.hbm [resolvable:$true] %s2945_s22 }
 0x7fb   : > { %s4167_s15 = sshra.s32 %s2946_s22, 4  ;;  %s4168_s15 = int_to_ptr.hbm [resolvable:$true] %s4167_s15 }
 0x7fc   : > { %s4169_s0 = scalar_lea.hbm %s4168_s15, 8  ;;  %p4174_p6 = scmp.lt.s32.totalorder %s4168_s15, %s5018_s14 }
 0x7fd   : > { %p4170_p2 = scmp.ne.s32.totalorder %s4168_s15, %s4169_s0  ;;  %p4175_p7 = scmp.lt.s32.totalorder %s4173_s3, %s4169_s0 }
 0x7ff   : > { %p4171_p4 = pnand %p4170_p2, %p4380_p3  ;;  %p4176_p8 = por %p4175_p7, %p4174_p6 }
 0x801   : > { %p4172_p5 = pneg %p4171_p4 }
 0x803   : > { %p4177_p10 = pnand %p4176_p8, %p4172_p5 }
 0x805   : > { %4180 = shalt.err (!%p4177_p10)
}
 0x806   : > { %4028 = dma.vmem_to_hbm [thread:$0]  (%p4380_p3), %s2944_s28, 128, %s2946_s22, %s2931_s25  }
 0x807 PF: > { %s5020_s13 = sld [smem:[#allocation12_spill]] }
 0x808   : > { %s5021_s4 = sld [smem:[#allocation5_spill]] }
 0x80d   : > { %p4034_p11 = scmp.ge.s32.totalorder %s5020_s13, 2 }
 0x80e   : > { %s2957_s23 = sand.u32 1, %s5021_s4  }
 0x80f   : > { %p4031_p12 = pnand %p4034_p11, %p4390_p9  ;;  %s2958_s24 = scalar_lea.sflag [#allocation3], %s2957_s23 }
 0x811   : > { %p4032_p13 = pneg %p4031_p12 }
 0x813   : > { %4214 = dma.done.wait (%p4032_p13), %s2958_s24, 128  }
 0x814   : > { %4216 = vsyncadd (%p4032_p13), %s2958_s24, 4294967168  ;;  %s28_s25 = sadd.s32 1, %s5020_s13   ;;  %s5023_s18 = sld [smem:[#allocation6_spill]] }
 0x815   : > { %p25_p0 = scmp.ge.s32.totalorder %s28_s25, 6   ;;  %s5024_s19 = sld [smem:[#allocation7_spill]] }
 0x816   : > { %s5025_s20 = sld [smem:[#allocation17_spill]] }
 0x817   : > { %s5026_s21 = sld [smem:[#allocation10_spill]]  ;;  %27 = sbr.rel (!%p25_p0) target bundleno = 14 (0xe), region = 159 }
 0x818   : > { %s5027_s22 = sld [smem:[#allocation11_spill]] }
 0x819   : > { %s5028_s23 = sld [smem:[#allocation13_spill]] }
 0x81a   : > { %s5029_s24 = sld [smem:[#allocation15_spill]] }
 0x81c   :  { %2964 = vsyncpa [#allocation3], 1 }
 0x81d   :  { %2966 = vsyncpa [#allocation3 + $0x1], 1 }

</bundles_post_ra>
